<compile_context>
chip_gen: v7x
topology: tpu7x:2x2x1
jax: 0.10.0
libtpu: 0.0.40
codegen_flags: <defaults>
</compile_context>

<pallas_src>
import jax
import jax.numpy as jnp
from jax.experimental import pallas as pl
from jax.experimental.pallas import tpu as pltpu

# Model constants
C_IN, C_OUT = 4, 16
FC_IN, FC_HID, FC_OUT = 10416, 128, 21
GROUP = 8            # spatial rows packed per lane-dense conv output row (8*16=128)
K_TILES = 4          # reduction tiles for the fused fc1+fc2 kernel


def _round_up(x, m):
    return ((x + m - 1) // m) * m


# ----------------------------------------------------------------------------
# Kernel 1: conv-as-matmul + bias + ReLU, lane-dense (.., 128) output
# ----------------------------------------------------------------------------
def _conv_kernel(p_ref, w_ref, b_ref, o_ref):
    acc = jnp.dot(p_ref[...], w_ref[...], preferred_element_type=jnp.float32)
    o_ref[...] = jnp.maximum(acc + b_ref[...], 0.0).astype(o_ref.dtype)


def conv_matmul(p2, wc_big, bc_tile):
    """p2: (R, 288) f32, wc_big: (288, 128) f32, bc_tile: (1, 128) f32 -> (R,128) bf16."""
    R, Kc = p2.shape
    N = wc_big.shape[1]
    return pl.pallas_call(
        _conv_kernel,
        out_shape=jax.ShapeDtypeStruct((R, N), jnp.bfloat16),
        grid=(1,),
        in_specs=[
            pl.BlockSpec((R, Kc), lambda i: (0, 0)),
            pl.BlockSpec((Kc, N), lambda i: (0, 0)),
            pl.BlockSpec((1, N), lambda i: (0, 0)),
        ],
        out_specs=pl.BlockSpec((R, N), lambda i: (0, 0)),
        compiler_params=pltpu.CompilerParams(dimension_semantics=("arbitrary",)),
    )(p2, wc_big, bc_tile)


# ----------------------------------------------------------------------------
# Kernel 2: fused fc1 (K-tiled, accumulated) + ReLU + fc2 epilogue
# ----------------------------------------------------------------------------
def _mlp_kernel(x_ref, w1_ref, b1_ref, w2_ref, b2_ref, o_ref, acc_ref):
    k = pl.program_id(0)

    @pl.when(k == 0)
    def _init():
        acc_ref[...] = jnp.zeros_like(acc_ref)

    # bf16 x bf16 -> f32 accumulation of this K-chunk of fc1.
    acc_ref[...] += jnp.dot(x_ref[...], w1_ref[...],
                            preferred_element_type=jnp.float32)

    @pl.when(k == pl.num_programs(0) - 1)
    def _finalize():
        h = jnp.maximum(acc_ref[...] + b1_ref[...], 0.0).astype(jnp.bfloat16)
        out = jnp.dot(h, w2_ref[...], preferred_element_type=jnp.float32)
        o_ref[...] = out + b2_ref[...]


def mlp_fused(flat, w1, b1, w2, b2, *, k_tiles):
    """flat: (B, K) bf16, w1: (K, 128) bf16, w2: (128, 128) bf16 -> (B, 128) f32."""
    Bm, K = flat.shape
    assert K % (k_tiles * 128) == 0
    Kc = K // k_tiles
    N = w1.shape[1]
    M2 = w2.shape[1]
    cost = pl.CostEstimate(
        flops=2 * Bm * K * N + 2 * Bm * N * M2,
        transcendentals=0,
        bytes_accessed=(flat.size * flat.dtype.itemsize
                        + w1.size * w1.dtype.itemsize
                        + w2.size * w2.dtype.itemsize
                        + Bm * M2 * 4),
    )
    return pl.pallas_call(
        _mlp_kernel,
        out_shape=jax.ShapeDtypeStruct((Bm, M2), jnp.float32),
        grid=(k_tiles,),
        in_specs=[
            pl.BlockSpec((Bm, Kc), lambda k: (0, k)),   # activation K-chunk
            pl.BlockSpec((Kc, N), lambda k: (k, 0)),    # fc1 weight K-chunk (streamed)
            pl.BlockSpec((1, N), lambda k: (0, 0)),     # fc1 bias (resident)
            pl.BlockSpec((N, M2), lambda k: (0, 0)),    # fc2 weight (resident)
            pl.BlockSpec((1, M2), lambda k: (0, 0)),    # fc2 bias (resident)
        ],
        out_specs=pl.BlockSpec((Bm, M2), lambda k: (0, 0)),
        scratch_shapes=[pltpu.VMEM((Bm, N), jnp.float32)],
        compiler_params=pltpu.CompilerParams(dimension_semantics=("arbitrary",)),
        cost_estimate=cost,
    )(flat, w1, b1, w2, b2)


# ----------------------------------------------------------------------------
# Glue: im2col for a 3x3 / stride 2 / pad 1 convolution (NHWC)
# ----------------------------------------------------------------------------
def im2col_s2(x_nhwc, kh=3, kw=3, stride=2, pad=1):
    B, H, W, C = x_nhwc.shape
    xp = jnp.pad(x_nhwc, ((0, 0), (pad, pad), (pad, pad), (0, 0)))
    out_h = (H + 2 * pad - kh) // stride + 1
    out_w = (W + 2 * pad - kw) // stride + 1
    cols = []
    for i in range(kh):
        for j in range(kw):
            cols.append(
                xp[:, i:i + stride * out_h:stride, j:j + stride * out_w:stride, :])
    patches = jnp.concatenate(cols, axis=-1)          # (B, oh, ow, kh*kw*C)
    return patches.reshape(B, out_h * out_w, kh * kw * C), out_h, out_w


# ----------------------------------------------------------------------------
# Parameters (deterministic, synthetic) + one-time prep (permute/pad/cast)
# ----------------------------------------------------------------------------
def init_params(key):
    k = jax.random.split(key, 6)
    return {
        # PyTorch Conv2d weight layout: (out_ch, in_ch, kh, kw)
        "conv_w": jax.random.normal(k[0], (C_OUT, C_IN, 3, 3), jnp.float32) * 0.1,
        "conv_b": jax.random.normal(k[1], (C_OUT,), jnp.float32) * 0.01,
        # fc1 rows follow the PyTorch NCHW flatten order: row = c*(oh*ow) + p
        "fc1_w": jax.random.normal(k[2], (FC_IN, FC_HID), jnp.float32) * 0.02,
        "fc1_b": jax.random.normal(k[3], (FC_HID,), jnp.float32) * 0.01,
        "fc2_w": jax.random.normal(k[4], (FC_HID, FC_OUT), jnp.float32) * 0.02,
        "fc2_b": jax.random.normal(k[5], (FC_OUT,), jnp.float32) * 0.01,
    }


def prepare_params(params, oh=21, ow=31):
    P = oh * ow
    P_pad = _round_up(P, GROUP * K_TILES)
    # conv weight -> (kh*kw*cin, cout), then block-diagonal over GROUP spatial
    # rows so the conv matmul output minor dim is GROUP*C_OUT = 128 (lane-dense).
    wc_mat = jnp.transpose(params["conv_w"], (2, 3, 1, 0)).reshape(9 * C_IN, C_OUT)
    wc_big = jnp.kron(jnp.eye(GROUP, dtype=jnp.float32), wc_mat)       # (288, 128)
    bc_tile = jnp.tile(params["conv_b"], GROUP).reshape(1, GROUP * C_OUT)
    # fc1 rows: NCHW (c-major) -> (p, c) order emitted by the conv kernel,
    # zero-padded rows for the padded spatial positions.
    w1 = params["fc1_w"].reshape(C_OUT, P, FC_HID).transpose(1, 0, 2)
    w1 = w1.reshape(P * C_OUT, FC_HID)
    w1 = jnp.pad(w1, ((0, (P_pad - P) * C_OUT), (0, 0))).astype(jnp.bfloat16)
    b1 = params["fc1_b"].reshape(1, FC_HID).astype(jnp.float32)
    # fc2 padded to a lane-dense 128-wide output; sliced back in the wrapper.
    w2 = jnp.pad(params["fc2_w"], ((0, 0), (0, 128 - FC_OUT))).astype(jnp.bfloat16)
    b2 = jnp.pad(params["fc2_b"], (0, 128 - FC_OUT)).reshape(1, 128).astype(jnp.float32)
    return {"wc_big": wc_big, "bc_tile": bc_tile,
            "w1": w1, "b1": b1, "w2": w2, "b2": b2}


# ----------------------------------------------------------------------------
# Forward pass (matches NaiveAttention.forward semantics)
# ----------------------------------------------------------------------------
def naive_attention_forward(prepped, x_nchw):
    B = x_nchw.shape[0]
    x_nhwc = jnp.transpose(x_nchw, (0, 2, 3, 1))
    patches, oh, ow = im2col_s2(x_nhwc)                     # (B, P, 36)
    P = oh * ow
    P_pad = _round_up(P, GROUP * K_TILES)
    patches = jnp.pad(patches, ((0, 0), (0, P_pad - P), (0, 0)))
    # pack GROUP=8 spatial positions per row -> lane-dense conv matmul input
    p2 = patches.reshape(B, P_pad // GROUP, GROUP * patches.shape[-1])
    p2 = p2.reshape(B * (P_pad // GROUP), GROUP * 9 * C_IN)         # (168, 288)

    conv_out = conv_matmul(p2, prepped["wc_big"], prepped["bc_tile"])  # (168,128) bf16

    # flatten in (spatial, channel) order (fc1 rows were permuted to match)
    flat = conv_out.reshape(B, (P_pad // GROUP) * 128)               # (B, P_pad*16)
    assert flat.shape[1] == prepped["w1"].shape[0]

    out_pad = mlp_fused(flat, prepped["w1"], prepped["b1"],
                        prepped["w2"], prepped["b2"], k_tiles=K_TILES)
    return out_pad[:, :FC_OUT]


# Pure-jnp reference with the same precision policy (bf16 weights, f32 accum)
def reference_forward(params, x_nchw):
    B = x_nchw.shape[0]
    x_nhwc = jnp.transpose(x_nchw, (0, 2, 3, 1))
    patches, oh, ow = im2col_s2(x_nhwc)                     # (B, P, 36)
    w_mat = jnp.transpose(params["conv_w"], (2, 3, 1, 0)).reshape(9 * C_IN, C_OUT)
    feat = jnp.maximum(patches @ w_mat + params["conv_b"], 0.0)      # (B, P, 16)
    flat = jnp.transpose(feat, (0, 2, 1)).reshape(B, -1)             # NCHW flatten
    flat = flat.astype(jnp.bfloat16)
    h = jnp.maximum(
        jnp.dot(flat, params["fc1_w"].astype(jnp.bfloat16),
                preferred_element_type=jnp.float32) + params["fc1_b"], 0.0)
    out = jnp.dot(h.astype(jnp.bfloat16), params["fc2_w"].astype(jnp.bfloat16),
                  preferred_element_type=jnp.float32) + params["fc2_b"]
    return out


if __name__ == "__main__":
    key = jax.random.PRNGKey(0)
    pkey, xkey = jax.random.split(key)
    params = init_params(pkey)

    # Input spatial (42, 62) -> conv output (21, 31); 16*21*31 = 10416,
    # consistent with PoseRegress(10416, 21).
    x = jax.random.normal(xkey, (2, 4, 42, 62), jnp.float32)

    prepped = prepare_params(params, oh=21, ow=31)
    fwd = jax.jit(naive_attention_forward)

    out = jax.block_until_ready(fwd(prepped, x))
    assert out.shape == (2, FC_OUT), out.shape

    ref = jax.block_until_ready(reference_forward(params, x))
    assert jnp.allclose(out, ref, atol=2e-2, rtol=2e-2), "mismatch vs reference"

    print("KERNEL_OK")
</pallas_src>

<mosaic_0001>
module attributes {stable_mosaic.version = 11 : i64} {
  func.func @_conv_kernel(%arg0: i32, %arg1: memref<168x288xf32, #tpu.memory_space<vmem>>, %arg2: memref<288x128xf32, #tpu.memory_space<vmem>>, %arg3: memref<1x128xf32, #tpu.memory_space<vmem>>, %arg4: memref<168x128xbf16, #tpu.memory_space<vmem>>) attributes {dimension_semantics = [#tpu.dimension_semantics<arbitrary>], iteration_bounds = array<i64: 1>, scalar_prefetch = 0 : i64, scratch_operands = 0 : i64, tpu.core_type = #tpu.core_type<tc>, window_params = [{pipeline_mode = #tpu.pipeline_mode<synchronous>, transform_indices = @transform_0, window_bounds = array<i64: 168, 288>}, {pipeline_mode = #tpu.pipeline_mode<synchronous>, transform_indices = @transform_1, window_bounds = array<i64: 288, 128>}, {pipeline_mode = #tpu.pipeline_mode<synchronous>, transform_indices = @transform_2, window_bounds = array<i64: 1, 128>}, {pipeline_mode = #tpu.pipeline_mode<synchronous>, transform_indices = @transform_3, window_bounds = array<i64: 168, 128>}]} {
    %c0 = arith.constant 0 : index
    %c0_0 = arith.constant 0 : index
    %0 = vector.load %arg1[%c0, %c0_0] : memref<168x288xf32, #tpu.memory_space<vmem>>, vector<168x288xf32>
    %c0_1 = arith.constant 0 : index
    %c0_2 = arith.constant 0 : index
    %1 = vector.load %arg2[%c0_1, %c0_2] : memref<288x128xf32, #tpu.memory_space<vmem>>, vector<288x128xf32>
    %cst = arith.constant dense<0.000000e+00> : vector<168x128xf32>
    %2 = tpu.matmul %0, %1, %cst {dimension_numbers = #tpu.dot_dimension_numbers<[1], [0], [0], [1], [0, 0, 1, 1], [], []>} : vector<168x288xf32>, vector<288x128xf32>, vector<168x128xf32> -> vector<168x128xf32>
    %c0_3 = arith.constant 0 : index
    %c0_4 = arith.constant 0 : index
    %3 = vector.load %arg3[%c0_3, %c0_4] : memref<1x128xf32, #tpu.memory_space<vmem>>, vector<1x128xf32>
    %4 = vector.broadcast %3 : vector<1x128xf32> to vector<168x128xf32>
    %5 = arith.addf %2, %4 : vector<168x128xf32>
    %cst_5 = arith.constant 0.000000e+00 : f32
    %6 = vector.broadcast %cst_5 : f32 to vector<168x128xf32>
    %7 = arith.maximumf %5, %6 : vector<168x128xf32>
    %8 = arith.truncf %7 : vector<168x128xf32> to vector<168x128xbf16>
    %c0_6 = arith.constant 0 : index
    %c0_7 = arith.constant 0 : index
    %9 = vector.load %arg4[%c0_6, %c0_7] : memref<168x128xbf16, #tpu.memory_space<vmem>>, vector<168x128xbf16>
    tpu.vector_store %arg4[%c0_6, %c0_7], %8 {strides = array<i32>} : memref<168x128xbf16, #tpu.memory_space<vmem>>, vector<168x128xbf16>,
    return
  }
  func.func @transform_0(%arg0: i32) -> (i32, i32) {
    %c0_i32 = arith.constant 0 : i32
    %c0_i32_0 = arith.constant 0 : i32
    %c0_i32_1 = arith.constant 0 : i32
    return %c0_i32, %c0_i32_0 : i32, i32
  }
  func.func @transform_1(%arg0: i32) -> (i32, i32) {
    %c0_i32 = arith.constant 0 : i32
    %c0_i32_0 = arith.constant 0 : i32
    %c0_i32_1 = arith.constant 0 : i32
    return %c0_i32, %c0_i32_0 : i32, i32
  }
  func.func @transform_2(%arg0: i32) -> (i32, i32) {
    %c0_i32 = arith.constant 0 : i32
    %c0_i32_0 = arith.constant 0 : i32
    %c0_i32_1 = arith.constant 0 : i32
    return %c0_i32, %c0_i32_0 : i32, i32
  }
  func.func @transform_3(%arg0: i32) -> (i32, i32) {
    %c0_i32 = arith.constant 0 : i32
    %c0_i32_0 = arith.constant 0 : i32
    %c0_i32_1 = arith.constant 0 : i32
    return %c0_i32, %c0_i32_0 : i32, i32
  }
}

module attributes {stable_mosaic.version = 11 : i64} {
  func.func @_mlp_kernel(%arg0: i32, %arg1: memref<2x2688xbf16, #tpu.memory_space<vmem>>, %arg2: memref<2688x128xbf16, #tpu.memory_space<vmem>>, %arg3: memref<1x128xf32, #tpu.memory_space<vmem>>, %arg4: memref<128x128xbf16, #tpu.memory_space<vmem>>, %arg5: memref<1x128xf32, #tpu.memory_space<vmem>>, %arg6: memref<2x128xf32, #tpu.memory_space<vmem>>, %arg7: memref<2x128xf32, #tpu.memory_space<vmem>>) attributes {dimension_semantics = [#tpu.dimension_semantics<arbitrary>], iteration_bounds = array<i64: 4>, scalar_prefetch = 0 : i64, scratch_operands = 1 : i64, tpu.core_type = #tpu.core_type<tc>, window_params = [{transform_indices = @transform_0, window_bounds = array<i64: 2, 2688>}, {transform_indices = @transform_1, window_bounds = array<i64: 2688, 128>}, {pipeline_mode = #tpu.pipeline_mode<synchronous>, transform_indices = @transform_2, window_bounds = array<i64: 1, 128>}, {pipeline_mode = #tpu.pipeline_mode<synchronous>, transform_indices = @transform_3, window_bounds = array<i64: 128, 128>}, {pipeline_mode = #tpu.pipeline_mode<synchronous>, transform_indices = @transform_4, window_bounds = array<i64: 1, 128>}, {pipeline_mode = #tpu.pipeline_mode<synchronous>, transform_indices = @transform_5, window_bounds = array<i64: 2, 128>}]} {
    %c0_i32 = arith.constant 0 : i32
    %0 = arith.cmpi eq, %arg0, %c0_i32 : i32
    %1 = arith.extui %0 : i1 to i32
    %c0_i32_0 = arith.constant 0 : i32
    %2 = arith.cmpi ne, %1, %c0_i32_0 : i32
    scf.if %2 {
      %cst_9 = arith.constant 0.000000e+00 : f32
      %12 = vector.broadcast %cst_9 : f32 to vector<2x128xf32>
      %c0_10 = arith.constant 0 : index
      %c0_11 = arith.constant 0 : index
      %13 = vector.load %arg7[%c0_10, %c0_11] : memref<2x128xf32, #tpu.memory_space<vmem>>, vector<2x128xf32>
      tpu.vector_store %arg7[%c0_10, %c0_11], %12 {strides = array<i32>} : memref<2x128xf32, #tpu.memory_space<vmem>>, vector<2x128xf32>,
    } else {
    }
    %c0 = arith.constant 0 : index
    %c0_1 = arith.constant 0 : index
    %3 = vector.load %arg7[%c0, %c0_1] : memref<2x128xf32, #tpu.memory_space<vmem>>, vector<2x128xf32>
    %c0_2 = arith.constant 0 : index
    %c0_3 = arith.constant 0 : index
    %4 = vector.load %arg1[%c0_2, %c0_3] : memref<2x2688xbf16, #tpu.memory_space<vmem>>, vector<2x2688xbf16>
    %c0_4 = arith.constant 0 : index
    %c0_5 = arith.constant 0 : index
    %5 = vector.load %arg2[%c0_4, %c0_5] : memref<2688x128xbf16, #tpu.memory_space<vmem>>, vector<2688x128xbf16>
    %cst = arith.constant dense<0.000000e+00> : vector<2x128xf32>
    %6 = tpu.matmul %4, %5, %cst {dimension_numbers = #tpu.dot_dimension_numbers<[1], [0], [0], [1], [0, 0, 1, 1], [], []>} : vector<2x2688xbf16>, vector<2688x128xbf16>, vector<2x128xf32> -> vector<2x128xf32>
    %7 = arith.addf %3, %6 : vector<2x128xf32>
    %c0_6 = arith.constant 0 : index
    %c0_7 = arith.constant 0 : index
    %8 = vector.load %arg7[%c0_6, %c0_7] : memref<2x128xf32, #tpu.memory_space<vmem>>, vector<2x128xf32>
    tpu.vector_store %arg7[%c0_6, %c0_7], %7 {strides = array<i32>} : memref<2x128xf32, #tpu.memory_space<vmem>>, vector<2x128xf32>,
    %c3_i32 = arith.constant 3 : i32
    %9 = arith.cmpi eq, %arg0, %c3_i32 : i32
    %10 = arith.extui %9 : i1 to i32
    %c0_i32_8 = arith.constant 0 : i32
    %11 = arith.cmpi ne, %10, %c0_i32_8 : i32
    scf.if %11 {
      %c0_9 = arith.constant 0 : index
      %c0_10 = arith.constant 0 : index
      %12 = vector.load %arg7[%c0_9, %c0_10] : memref<2x128xf32, #tpu.memory_space<vmem>>, vector<2x128xf32>
      %c0_11 = arith.constant 0 : index
      %c0_12 = arith.constant 0 : index
      %13 = vector.load %arg3[%c0_11, %c0_12] : memref<1x128xf32, #tpu.memory_space<vmem>>, vector<1x128xf32>
      %14 = vector.broadcast %13 : vector<1x128xf32> to vector<2x128xf32>
      %15 = arith.addf %12, %14 : vector<2x128xf32>
      %cst_13 = arith.constant 0.000000e+00 : f32
      %16 = vector.broadcast %cst_13 : f32 to vector<2x128xf32>
      %17 = arith.maximumf %15, %16 : vector<2x128xf32>
      %18 = arith.truncf %17 : vector<2x128xf32> to vector<2x128xbf16>
      %c0_14 = arith.constant 0 : index
      %c0_15 = arith.constant 0 : index
      %19 = vector.load %arg4[%c0_14, %c0_15] : memref<128x128xbf16, #tpu.memory_space<vmem>>, vector<128x128xbf16>
      %cst_16 = arith.constant dense<0.000000e+00> : vector<2x128xf32>
      %20 = tpu.matmul %18, %19, %cst_16 {dimension_numbers = #tpu.dot_dimension_numbers<[1], [0], [0], [1], [0, 0, 1, 1], [], []>} : vector<2x128xbf16>, vector<128x128xbf16>, vector<2x128xf32> -> vector<2x128xf32>
      %c0_17 = arith.constant 0 : index
      %c0_18 = arith.constant 0 : index
      %21 = vector.load %arg5[%c0_17, %c0_18] : memref<1x128xf32, #tpu.memory_space<vmem>>, vector<1x128xf32>
      %22 = vector.broadcast %21 : vector<1x128xf32> to vector<2x128xf32>
      %23 = arith.addf %20, %22 : vector<2x128xf32>
      %c0_19 = arith.constant 0 : index
      %c0_20 = arith.constant 0 : index
      %24 = vector.load %arg6[%c0_19, %c0_20] : memref<2x128xf32, #tpu.memory_space<vmem>>, vector<2x128xf32>
      tpu.vector_store %arg6[%c0_19, %c0_20], %23 {strides = array<i32>} : memref<2x128xf32, #tpu.memory_space<vmem>>, vector<2x128xf32>,
    } else {
    }
    return
  }
  func.func @transform_0(%arg0: i32) -> (i32, i32) {
    %c0_i32 = arith.constant 0 : i32
    %c0_i32_0 = arith.constant 0 : i32
    return %c0_i32, %arg0 : i32, i32
  }
  func.func @transform_1(%arg0: i32) -> (i32, i32) {
    %c0_i32 = arith.constant 0 : i32
    %c0_i32_0 = arith.constant 0 : i32
    return %arg0, %c0_i32 : i32, i32
  }
  func.func @transform_2(%arg0: i32) -> (i32, i32) {
    %c0_i32 = arith.constant 0 : i32
    %c0_i32_0 = arith.constant 0 : i32
    %c0_i32_1 = arith.constant 0 : i32
    return %c0_i32, %c0_i32_0 : i32, i32
  }
  func.func @transform_3(%arg0: i32) -> (i32, i32) {
    %c0_i32 = arith.constant 0 : i32
    %c0_i32_0 = arith.constant 0 : i32
    %c0_i32_1 = arith.constant 0 : i32
    return %c0_i32, %c0_i32_0 : i32, i32
  }
  func.func @transform_4(%arg0: i32) -> (i32, i32) {
    %c0_i32 = arith.constant 0 : i32
    %c0_i32_0 = arith.constant 0 : i32
    %c0_i32_1 = arith.constant 0 : i32
    return %c0_i32, %c0_i32_0 : i32, i32
  }
  func.func @transform_5(%arg0: i32) -> (i32, i32) {
    %c0_i32 = arith.constant 0 : i32
    %c0_i32_0 = arith.constant 0 : i32
    %c0_i32_1 = arith.constant 0 : i32
    return %c0_i32, %c0_i32_0 : i32, i32
  }
}

</mosaic_0001>

<bundles_post_ra>
// kernel: naive_attention_forward.2
= control target key start
LH: loop header
LB: loop body
LE: loop exit
PB: predicated region body
PF: predicated region fallthrough
CT: control target
= control target key end

     0   :  { %v973_v0 = vmov 0.0|0.0   ;;  %vm974_vm0 = vmmov 0   ;;  %v975_v6 = vmov 0.0   ;;  %vm120_vm1 = vcmask 261120   ;;  %s1478_s1 = inlined_call_operand.vmem [shape: f32[288,128], index: 1, kind: input, shape index: {}]   ;;  %s1479_s0 = inlined_call_operand.vmem [shape: f32[168,288], index: 0, kind: input, shape index: {}]   ;;  %s1480_s2 = inlined_call_operand.vmem [shape: f32[1,128], index: 2, kind: input, shape index: {}]   ;;  %s1481_s3 = inlined_call_operand.vmem [shape: bf16[168,128], index: 3, kind: output, shape index: {}]  }
   0x1   :  { %874 = vmatprep.subr.bf16.mxu1 %v973_v0  ;;  %v77_v1 = vld [vmem:[%s1478_s1] sm:$0xff]  ;;  %v78_v2 = vld [vmem:[%s1478_s1 + $0x8] sm:$0xff]  ;;  %v79_v3 = vld [vmem:[%s1478_s1 + $0x10] sm:$0xff]  ;;  %922 = vmatprep.subr.bf16.mxu0 %v973_v0 }
   0x2   :  { %v875_v4 = vpack.c.bf16 %v78_v2, %v77_v1  ;;  %v80_v5 = vld [vmem:[%s1478_s1 + $0x18] sm:$0xff]  ;;  %811 = vmatprep.mubr.msk.f32.mxu0 %vm974_vm0, %v975_v6  ;;  %v81_v8 = vld [vmem:[%s1478_s1 + $0x20] sm:$0xff]  ;;  %v82_v9 = vld [vmem:[%s1478_s1 + $0x28] sm:$0xff] }
   0x3   :  { %v878_v7 = vpack.c.bf16 %v80_v5, %v79_v3  ;;  %v881_v10 = vpack.c.bf16 %v82_v9, %v81_v8  ;;  %v83_v11 = vld [vmem:[%s1478_s1 + $0x30] sm:$0xff]  ;;  %v84_v12 = vld [vmem:[%s1478_s1 + $0x38] sm:$0xff]  ;;  %v109_v13 = vld [vmem:[%s1478_s1 + $0x100] sm:$0xff] }
   0x4   :  { %876 = vmatpush1.bf16.msra.mxu1 %v875_v4  ;;  %v110_v14 = vld [vmem:[%s1478_s1 + $0x108] sm:$0xff]  ;;  %v884_v15 = vpack.c.bf16 %v84_v12, %v83_v11  ;;  %v111_v17 = vld [vmem:[%s1478_s1 + $0x110] sm:$0xff]  ;;  %v112_v18 = vld [vmem:[%s1478_s1 + $0x118] sm:$0xff] }
   0x5   :  { %877 = vmatprep.subr.bf16.mxu1 %v973_v0  ;;  %v923_v16 = vpack.c.bf16 %v110_v14, %v109_v13  ;;  %v85_v19 = vld [vmem:[%s1478_s1 + $0x40] sm:$0xff]  ;;  %v86_v20 = vld [vmem:[%s1478_s1 + $0x48] sm:$0xff]  ;;  %v926_v22 = vpack.c.bf16 %v112_v18, %v111_v17  ;;  %v87_v24 = vld [vmem:[%s1478_s1 + $0x50] sm:$0xff] }
   0x6   :  { %v15_v21 = vld [vmem:[%s1479_s0 + $0x8] sm:$0xff]  ;;  %v887_v23 = vpack.c.bf16 %v86_v20, %v85_v19  ;;  %v88_v25 = vld [vmem:[%s1478_s1 + $0x58] sm:$0xff]  ;;  %v16_v26 = vld [vmem:[%s1479_s0 + $0x10] sm:$0xff] }
   0x7   :  { %924 = vmatpush3.bf16.msra.mxu0 %v923_v16  ;;  %248 = vmatprep.mubr.f32.mxu1 %v15_v21  ;;  %v890_v27 = vpack.c.bf16 %v88_v25, %v87_v24  ;;  %v89_v28 = vld [vmem:[%s1478_s1 + $0x60] sm:$0xff]  ;;  %v90_v29 = vld [vmem:[%s1478_s1 + $0x68] sm:$0xff]  ;;  %v91_v32 = vld [vmem:[%s1478_s1 + $0x70] sm:$0xff] }
   0x8   :  { %879 = vmatpush1.bf16.msra.mxu1 %v878_v7  ;;  %925 = vmatprep.subr.bf16.mxu0 %v973_v0  ;;  %v19_v30 = vld [vmem:[%s1479_s0 + $0x28] sm:$0xff]  ;;  %v893_v31 = vpack.c.bf16 %v90_v29, %v89_v28  ;;  %v92_v33 = vld [vmem:[%s1478_s1 + $0x78] sm:$0xff]  ;;  %v22_v34 = vld [vmem:[%s1479_s0 + $0x40] sm:$0xff] }
   0x9   :  { %880 = vmatprep.subr.bf16.mxu1 %v973_v0  ;;  %v896_v35 = vpack.c.bf16 %v92_v33, %v91_v32  ;;  %v93_v36 = vld [vmem:[%s1478_s1 + $0x80] sm:$0xff]  ;;  %v94_v37 = vld [vmem:[%s1478_s1 + $0x88] sm:$0xff]  ;;  %v25_v38 = vld [vmem:[%s1479_s0 + $0x58] sm:$0xff] }
   0xa   :  { %v899_v39 = vpack.c.bf16 %v94_v37, %v93_v36  ;;  %v95_v40 = vld [vmem:[%s1478_s1 + $0x90] sm:$0xff]  ;;  %v96_v41 = vld [vmem:[%s1478_s1 + $0x98] sm:$0xff]  ;;  %v97_v44 = vld [vmem:[%s1478_s1 + $0xa0] sm:$0xff] }
   0xb   :  { %927 = vmatpush3.bf16.msra.mxu0 %v926_v22  ;;  %v28_v42 = vld [vmem:[%s1479_s0 + $0x70] sm:$0xff]  ;;  %v902_v43 = vpack.c.bf16 %v96_v41, %v95_v40  ;;  %v98_v45 = vld [vmem:[%s1478_s1 + $0xa8] sm:$0xff]  ;;  %v100_v49 = vld [vmem:[%s1478_s1 + $0xb8] sm:$0xff] }
   0xc   :  { %882 = vmatpush1.bf16.msra.mxu1 %v881_v10  ;;  %v31_v46 = vld [vmem:[%s1479_s0 + $0x88] sm:$0xff]  ;;  %v905_v47 = vpack.c.bf16 %v98_v45, %v97_v44  ;;  %v99_v48 = vld [vmem:[%s1478_s1 + $0xb0] sm:$0xff]  ;;  %v34_v50 = vld [vmem:[%s1479_s0 + $0xa0] sm:$0xff] }
   0xd   :  { %883 = vmatprep.subr.bf16.mxu1 %v973_v0  ;;  %v908_v51 = vpack.c.bf16 %v100_v49, %v99_v48  ;;  %v101_v52 = vld [vmem:[%s1478_s1 + $0xc0] sm:$0xff]  ;;  %v102_v53 = vld [vmem:[%s1478_s1 + $0xc8] sm:$0xff]  ;;  %v37_v54 = vld [vmem:[%s1479_s0 + $0xb8] sm:$0xff] }
   0xe   :  { %812 = vmatmul.mubr.msk.f32.vlgmr.msra.gmra.mrb[0].mxu0 %vm120_vm1, %v16_v26  ;;  %v911_v55 = vpack.c.bf16 %v102_v53, %v101_v52  ;;  %v103_v56 = vld [vmem:[%s1478_s1 + $0xd0] sm:$0xff]  ;;  %v104_v57 = vld [vmem:[%s1478_s1 + $0xd8] sm:$0xff]  ;;  %v105_v60 = vld [vmem:[%s1478_s1 + $0xe0] sm:$0xff] }
   0xf   :  { %814 = vmatprep.mubr.msk.f32.mxu0 %vm974_vm0, %v975_v6  ;;  %v40_v58 = vld [vmem:[%s1479_s0 + $0xd0] sm:$0xff]  ;;  %v914_v59 = vpack.c.bf16 %v104_v57, %v103_v56  ;;  %v106_v61 = vld [vmem:[%s1478_s1 + $0xe8] sm:$0xff]  ;;  %v108_v2 = vld [vmem:[%s1478_s1 + $0xf8] sm:$0xff] }
  0x10   :  { %885 = vmatpush1.bf16.msra.mxu1 %v884_v15  ;;  %v43_v62 = vld [vmem:[%s1479_s0 + $0xe8] sm:$0xff]  ;;  %v917_v63 = vpack.c.bf16 %v106_v61, %v105_v60  ;;  %v107_v1 = vld [vmem:[%s1478_s1 + $0xf0] sm:$0xff]  ;;  %v46_v3 = vld [vmem:[%s1479_s0 + $0x100] sm:$0xff] }
  0x11   :  { %886 = vmatprep.subr.bf16.mxu1 %v973_v0  ;;  %v920_v4 = vpack.c.bf16 %v108_v2, %v107_v1  ;;  %v49_v5 = vld [vmem:[%s1479_s0 + $0x118] sm:$0xff]  ;;  %v14_v7 = vld [vmem:[%s1479_s0] sm:$0xff]  ;;  %v55_v11 = vld [vmem:[%s1479_s0 + $0x148] sm:$0xff] }
  0x12   :  { %815 = vmatmul.mubr.msk.f32.gmra.mrb[2].mxu0 %vm120_vm1, %v19_v30  ;;  %v18_v8 = vld [vmem:[%s1479_s0 + $0x20] sm:$0xff]  ;;  %v17_v9 = vld [vmem:[%s1479_s0 + $0x18] sm:$0xff]  ;;  %v20_v12 = vld [vmem:[%s1479_s0 + $0x30] sm:$0xff] }
  0x13   :  { %817 = vmatprep.mubr.msk.f32.mxu0 %vm974_vm0, %v975_v6  ;;  %v21_v10 = vld [vmem:[%s1479_s0 + $0x38] sm:$0xff]  ;;  %v24_v13 = vld [vmem:[%s1479_s0 + $0x50] sm:$0xff]  ;;  %v58_v14 = vld [vmem:[%s1479_s0 + $0x160] sm:$0xff] }
  0x14   :  { %888 = vmatpush1.bf16.msra.mxu1 %v887_v23  ;;  %v23_v15 = vld [vmem:[%s1479_s0 + $0x48] sm:$0xff]  ;;  %v61_v17 = vld [vmem:[%s1479_s0 + $0x178] sm:$0xff]  ;;  %v26_v18 = vld [vmem:[%s1479_s0 + $0x60] sm:$0xff] }
  0x15   :  { %889 = vmatprep.subr.bf16.mxu1 %v973_v0  ;;  %v27_v16 = vld [vmem:[%s1479_s0 + $0x68] sm:$0xff]  ;;  %v30_v19 = vld [vmem:[%s1479_s0 + $0x80] sm:$0xff]  ;;  %v64_v20 = vld [vmem:[%s1479_s0 + $0x190] sm:$0xff] }
  0x16   :  { %818 = vmatmul.mubr.msk.f32.gmra.mrb[4].mxu0 %vm120_vm1, %v22_v34  ;;  %v29_v21 = vld [vmem:[%s1479_s0 + $0x78] sm:$0xff]  ;;  %v67_v23 = vld [vmem:[%s1479_s0 + $0x1a8] sm:$0xff]  ;;  %v32_v24 = vld [vmem:[%s1479_s0 + $0x90] sm:$0xff] }
  0x17   :  { %820 = vmatprep.mubr.msk.f32.mxu0 %vm974_vm0, %v975_v6  ;;  %v33_v22 = vld [vmem:[%s1479_s0 + $0x98] sm:$0xff]  ;;  %v36_v25 = vld [vmem:[%s1479_s0 + $0xb0] sm:$0xff]  ;;  %v70_v26 = vld [vmem:[%s1479_s0 + $0x1c0] sm:$0xff] }
  0x18   :  { %891 = vmatpush1.bf16.msra.mxu1 %v890_v27  ;;  %v35_v27 = vld [vmem:[%s1479_s0 + $0xa8] sm:$0xff]  ;;  %v73_v29 = vld [vmem:[%s1479_s0 + $0x1d8] sm:$0xff]  ;;  %v38_v30 = vld [vmem:[%s1479_s0 + $0xc0] sm:$0xff] }
  0x19   :  { %892 = vmatprep.subr.bf16.mxu1 %v973_v0  ;;  %v39_v28 = vld [vmem:[%s1479_s0 + $0xc8] sm:$0xff]  ;;  %v76_v32 = vld [vmem:[%s1479_s0 + $0x1f0] sm:$0xff]  ;;  %v41_v33 = vld [vmem:[%s1479_s0 + $0xd8] sm:$0xff] }
  0x1a   :  { %821 = vmatmul.mubr.msk.f32.gmra.mrb[6].mxu0 %vm120_vm1, %v25_v38  ;;  %v45_v34 = vld [vmem:[%s1479_s0 + $0xf8] sm:$0xff]  ;;  %v47_v36 = vld [vmem:[%s1479_s0 + $0x108] sm:$0xff]  ;;  %v50_v38 = vld [vmem:[%s1479_s0 + $0x120] sm:$0xff] }
  0x1b   :  { %823 = vmatprep.mubr.msk.f32.mxu0 %vm974_vm0, %v975_v6  ;;  %v51_v37 = vld [vmem:[%s1479_s0 + $0x128] sm:$0xff]  ;;  %v53_v40 = vld [vmem:[%s1479_s0 + $0x138] sm:$0xff] }
  0x1c   :  { %894 = vmatpush1.bf16.msra.mxu1 %v893_v31  ;;  %v42_v31 = vld [vmem:[%s1479_s0 + $0xe0] sm:$0xff]  ;;  %v57_v41 = vld [vmem:[%s1479_s0 + $0x158] sm:$0xff]  ;;  %v59_v44 = vld [vmem:[%s1479_s0 + $0x168] sm:$0xff] }
  0x1d   :  { %895 = vmatprep.subr.bf16.mxu1 %v973_v0  ;;  %v63_v45 = vld [vmem:[%s1479_s0 + $0x188] sm:$0xff]  ;;  %v65_v48 = vld [vmem:[%s1479_s0 + $0x198] sm:$0xff] }
  0x1e   :  { %824 = vmatmul.mubr.msk.f32.gmra.mrb[8].mxu0 %vm120_vm1, %v28_v42  ;;  %v56_v42 = vld [vmem:[%s1479_s0 + $0x150] sm:$0xff]  ;;  %v69_v49 = vld [vmem:[%s1479_s0 + $0x1b8] sm:$0xff]  ;;  %v71_v52 = vld [vmem:[%s1479_s0 + $0x1c8] sm:$0xff] }
  0x1f   :  { %826 = vmatprep.mubr.msk.f32.mxu0 %vm974_vm0, %v975_v6  ;;  %v75_v53 = vld [vmem:[%s1479_s0 + $0x1e8] sm:$0xff] }
  0x20   :  { %897 = vmatpush1.bf16.msra.mxu1 %v896_v35  ;;  %v48_v35 = vld [vmem:[%s1479_s0 + $0x110] sm:$0xff] }
  0x21   :  { %898 = vmatprep.subr.bf16.mxu1 %v973_v0 }
  0x22   :  { %827 = vmatmul.mubr.msk.f32.gmra.mrb[10].mxu0 %vm120_vm1, %v31_v46  ;;  %v62_v46 = vld [vmem:[%s1479_s0 + $0x180] sm:$0xff] }
  0x23   :  { %829 = vmatprep.mubr.msk.f32.mxu0 %vm974_vm0, %v975_v6 }
  0x24   :  { %900 = vmatpush1.bf16.msra.mxu1 %v899_v39  ;;  %v54_v39 = vld [vmem:[%s1479_s0 + $0x140] sm:$0xff] }
  0x25   :  { %901 = vmatprep.subr.bf16.mxu1 %v973_v0 }
  0x26   :  { %830 = vmatmul.mubr.msk.f32.gmra.mrb[12].mxu0 %vm120_vm1, %v34_v50  ;;  %v68_v50 = vld [vmem:[%s1479_s0 + $0x1b0] sm:$0xff] }
  0x27   :  { %832 = vmatprep.mubr.msk.f32.mxu0 %vm974_vm0, %v975_v6 }
  0x28   :  { %903 = vmatpush1.bf16.msra.mxu1 %v902_v43  ;;  %v60_v43 = vld [vmem:[%s1479_s0 + $0x170] sm:$0xff] }
  0x29   :  { %904 = vmatprep.subr.bf16.mxu1 %v973_v0 }
  0x2a   :  { %833 = vmatmul.mubr.msk.f32.gmra.mrb[14].mxu0 %vm120_vm1, %v37_v54  ;;  %v74_v54 = vld [vmem:[%s1479_s0 + $0x1e0] sm:$0xff] }
  0x2b   :  { %835 = vmatprep.mubr.msk.f32.mxu0 %vm974_vm0, %v975_v6 }
  0x2c   :  { %906 = vmatpush1.bf16.msra.mxu1 %v905_v47  ;;  %v66_v47 = vld [vmem:[%s1479_s0 + $0x1a0] sm:$0xff] }
  0x2d   :  { %907 = vmatprep.subr.bf16.mxu1 %v973_v0 }
  0x2e   :  { %836 = vmatmul.mubr.msk.f32.gmra.mrb[16].mxu0 %vm120_vm1, %v40_v58 }
  0x2f   :  { %838 = vmatprep.mubr.msk.f32.mxu0 %vm974_vm0, %v975_v6 }
  0x30   :  { %909 = vmatpush1.bf16.msra.mxu1 %v908_v51  ;;  %v72_v51 = vld [vmem:[%s1479_s0 + $0x1d0] sm:$0xff] }
  0x31   :  { %910 = vmatprep.subr.bf16.mxu1 %v973_v0 }
  0x32   :  { %839 = vmatmul.mubr.msk.f32.gmra.mrb[18].mxu0 %vm120_vm1, %v43_v62 }
  0x33   :  { %841 = vmatprep.mubr.msk.f32.mxu0 %vm974_vm0, %v975_v6 }
  0x34   :  { %912 = vmatpush1.bf16.msra.mxu1 %v911_v55 }
  0x35   :  { %913 = vmatprep.subr.bf16.mxu1 %v973_v0 }
  0x36   :  { %842 = vmatmul.mubr.msk.f32.gmra.mrb[20].mxu0 %vm120_vm1, %v46_v3 }
  0x37   :  { %844 = vmatprep.mubr.msk.f32.mxu0 %vm974_vm0, %v975_v6 }
  0x38   :  { %915 = vmatpush1.bf16.msra.mxu1 %v914_v59 }
  0x39   :  { %916 = vmatprep.subr.bf16.mxu1 %v973_v0 }
  0x3a   :  { %845 = vmatmul.mubr.msk.f32.gmra.mrb[22].mxu0 %vm120_vm1, %v49_v5 }
  0x3b   :  { %847 = vmatprep.mubr.msk.f32.mxu0 %vm974_vm0, %v975_v6 }
  0x3c   :  { %918 = vmatpush1.bf16.msra.mxu1 %v917_v63 }
  0x3d   :  { %919 = vmatprep.subr.bf16.mxu1 %v973_v0  ;;  %v52_v0 = vld [vmem:[%s1479_s0 + $0x130] sm:$0xff] }
  0x3e   :  { %848 = vmatmul.mubr.msk.f32.gmra.mrb[24].mxu0 %vm120_vm1, %v52_v0 }
  0x3f   :  { %850 = vmatprep.mubr.msk.f32.mxu0 %vm974_vm0, %v975_v6 }
  0x40   :  { %921 = vmatpush1.bf16.msra.mxu1 %v920_v4 }
  0x42   :  { %851 = vmatmul.mubr.msk.f32.gmra.mrb[26].mxu0 %vm120_vm1, %v55_v11 }
  0x43   :  { %249 = vmatmul.mubr.f32.vlgmr.msra.gmra.mrb[0].mxu1 %v14_v7  ;;  %853 = vmatprep.mubr.msk.f32.mxu0 %vm974_vm0, %v975_v6 }
  0x44   :  { %253 = vmatprep.mubr.f32.mxu1 %v18_v8 }
  0x46   :  { %854 = vmatmul.mubr.msk.f32.gmra.mrb[28].mxu0 %vm120_vm1, %v58_v14  ;;  %v1387_v14 = vld [vmem:[%s1480_s2] ss:$0 sm:$0xff] }
  0x47   :  { %254 = vmatmul.mubr.f32.gmra.mrb[2].mxu1 %v17_v9  ;;  %856 = vmatprep.mubr.msk.f32.mxu0 %vm974_vm0, %v975_v6 }
  0x48   :  { %258 = vmatprep.mubr.f32.mxu1 %v21_v10 }
  0x4a   :  { %857 = vmatmul.mubr.msk.f32.gmra.mrb[30].mxu0 %vm120_vm1, %v61_v17 }
  0x4b   :  { %259 = vmatmul.mubr.f32.gmra.mrb[4].mxu1 %v20_v12  ;;  %859 = vmatprep.mubr.msk.f32.mxu0 %vm974_vm0, %v975_v6 }
  0x4c   :  { %263 = vmatprep.mubr.f32.mxu1 %v24_v13 }
  0x4e   :  { %860 = vmatmul.mubr.msk.f32.gmra.mrb[32].mxu0 %vm120_vm1, %v64_v20 }
  0x4f   :  { %264 = vmatmul.mubr.f32.gmra.mrb[6].mxu1 %v23_v15  ;;  %862 = vmatprep.mubr.msk.f32.mxu0 %vm974_vm0, %v975_v6 }
  0x50   :  { %268 = vmatprep.mubr.f32.mxu1 %v27_v16 }
  0x52   :  { %863 = vmatmul.mubr.msk.f32.gmra.mrb[34].mxu0 %vm120_vm1, %v67_v23 }
  0x53   :  { %269 = vmatmul.mubr.f32.gmra.mrb[8].mxu1 %v26_v18  ;;  %865 = vmatprep.mubr.msk.f32.mxu0 %vm974_vm0, %v975_v6 }
  0x54   :  { %273 = vmatprep.mubr.f32.mxu1 %v30_v19 }
  0x56   :  { %866 = vmatmul.mubr.msk.f32.gmra.mrb[36].mxu0 %vm120_vm1, %v70_v26 }
  0x57   :  { %274 = vmatmul.mubr.f32.gmra.mrb[10].mxu1 %v29_v21  ;;  %868 = vmatprep.mubr.msk.f32.mxu0 %vm974_vm0, %v975_v6 }
  0x58   :  { %278 = vmatprep.mubr.f32.mxu1 %v33_v22 }
  0x5a   :  { %869 = vmatmul.mubr.msk.f32.gmra.mrb[38].mxu0 %vm120_vm1, %v73_v29 }
  0x5b   :  { %279 = vmatmul.mubr.f32.gmra.mrb[12].mxu1 %v32_v24  ;;  %871 = vmatprep.mubr.msk.f32.mxu0 %vm974_vm0, %v975_v6  ;;  %v44_v6 = vld [vmem:[%s1479_s0 + $0xf0] sm:$0xff] }
  0x5c   :  { %283 = vmatprep.mubr.f32.mxu1 %v36_v25 }
  0x5e   :  { %872 = vmatmul.mubr.msk.f32.gmra.mrb[40].mxu0 %vm120_vm1, %v76_v32 }
  0x5f   :  { %284 = vmatmul.mubr.f32.gmra.mrb[14].mxu1 %v35_v27 }
  0x60   :  { %288 = vmatprep.mubr.f32.mxu1 %v39_v28 }
  0x63   :  { %289 = vmatmul.mubr.f32.gmra.mrb[16].mxu1 %v38_v30 }
  0x64   :  { %293 = vmatprep.mubr.f32.mxu1 %v42_v31 }
  0x67   :  { %294 = vmatmul.mubr.f32.gmra.mrb[18].mxu1 %v41_v33 }
  0x68   :  { %298 = vmatprep.mubr.f32.mxu1 %v45_v34 }
  0x6b   :  { %299 = vmatmul.mubr.f32.gmra.mrb[20].mxu1 %v44_v6 }
  0x6c   :  { %303 = vmatprep.mubr.f32.mxu1 %v48_v35 }
  0x6f   :  { %304 = vmatmul.mubr.f32.gmra.mrb[22].mxu1 %v47_v36 }
  0x70   :  { %308 = vmatprep.mubr.f32.mxu1 %v51_v37 }
  0x73   :  { %309 = vmatmul.mubr.f32.gmra.mrb[24].mxu1 %v50_v38 }
  0x74   :  { %313 = vmatprep.mubr.f32.mxu1 %v54_v39 }
  0x77   :  { %314 = vmatmul.mubr.f32.gmra.mrb[26].mxu1 %v53_v40 }
  0x78   :  { %318 = vmatprep.mubr.f32.mxu1 %v57_v41 }
  0x7b   :  { %319 = vmatmul.mubr.f32.gmra.mrb[28].mxu1 %v56_v42 }
  0x7c   :  { %323 = vmatprep.mubr.f32.mxu1 %v60_v43 }
  0x7f   :  { %324 = vmatmul.mubr.f32.gmra.mrb[30].mxu1 %v59_v44 }
  0x80   :  { %328 = vmatprep.mubr.f32.mxu1 %v63_v45 }
  0x83   :  { %329 = vmatmul.mubr.f32.gmra.mrb[32].mxu1 %v62_v46 }
  0x84   :  { %333 = vmatprep.mubr.f32.mxu1 %v66_v47 }
  0x87   :  { %334 = vmatmul.mubr.f32.gmra.mrb[34].mxu1 %v65_v48 }
  0x88   :  { %338 = vmatprep.mubr.f32.mxu1 %v69_v49 }
  0x8b   :  { %339 = vmatmul.mubr.f32.gmra.mrb[36].mxu1 %v68_v50 }
  0x8c   :  { %343 = vmatprep.mubr.f32.mxu1 %v72_v51 }
  0x8f   :  { %344 = vmatmul.mubr.f32.gmra.mrb[38].mxu1 %v71_v52 }
  0x90   :  { %348 = vmatprep.mubr.f32.mxu1 %v75_v53 }
  0x93   :  { %349 = vmatmul.mubr.f32.gmra.mrb[40].mxu1 %v74_v54 }
  0xe1   :  { %v420_v55 = vpop.f32.mrb[0].mxu0 }
  0xe2   :  { %v813_v56 = vpop.f32.mrb[1].mxu0 }
  0xe5   :  { %v425_v57 = vpop.f32.mrb[2].mxu0 }
  0xe6   :  { %v816_v58 = vpop.f32.mrb[3].mxu0 }
  0xe9   :  { %v430_v59 = vpop.f32.mrb[4].mxu0 }
  0xea   :  { %v819_v60 = vpop.f32.mrb[5].mxu0 }
  0xed   :  { %v435_v61 = vpop.f32.mrb[6].mxu0 }
  0xee   :  { %v822_v62 = vpop.f32.mrb[7].mxu0 }
  0xf1   :  { %v440_v63 = vpop.f32.mrb[8].mxu0 }
  0xf2   :  { %v825_v1 = vpop.f32.mrb[9].mxu0 }
  0xf5   :  { %v445_v2 = vpop.f32.mrb[10].mxu0 }
  0xf6   :  { %v828_v3 = vpop.f32.mrb[11].mxu0 }
  0xf9   :  { %v1374_v4 = vpop.f32.mrb[12].mxu0 }
  0xfa   :  { %v831_v5 = vpop.f32.mrb[13].mxu0 }
  0xfd   :  { %v1376_v7 = vpop.f32.mrb[14].mxu0 }
  0xfe   :  { %v834_v8 = vpop.f32.mrb[15].mxu0 }
 0x101   :  { %v1378_v0 = vpop.f32.mrb[16].mxu0 }
 0x102   :  { %v837_v9 = vpop.f32.mrb[17].mxu0 }
 0x105   :  { %v1380_v10 = vpop.f32.mrb[18].mxu0 }
 0x106   :  { %v840_v11 = vpop.f32.mrb[19].mxu0 }
 0x109   :  { %v1382_v12 = vpop.f32.mrb[20].mxu0 }
 0x10a   :  { %v843_v13 = vpop.f32.mrb[21].mxu0 }
 0x10d   :  { %v1389_v15 = vpop.f32.mrb[22].mxu0 }
 0x10e   :  { %v846_v16 = vpop.f32.mrb[23].mxu0 }
 0x111   :  { %v1392_v20 = vpop.f32.mrb[24].mxu0 }
 0x112   :  { %v849_v22 = vpop.f32.mrb[25].mxu0 }
 0x115   :  { %v1395_v26 = vpop.f32.mrb[26].mxu0 }
 0x116   :  { %v250_v17 = vpop.f32.mrb[0].mxu1  ;;  %v852_v28 = vpop.f32.mrb[27].mxu0 }
 0x117   :  { %v251_v18 = vadd.f32 %v1387_v14, %v250_v17  ;;  %v252_v19 = vpop.f32.mrb[1].mxu1 }
 0x119   :  { %v421_v21 = vadd.f32 %v420_v55, %v251_v18  ;;  %v1398_v34 = vpop.f32.mrb[28].mxu0 }
 0x11a   :  { %v255_v23 = vpop.f32.mrb[2].mxu1  ;;  %v855_v36 = vpop.f32.mrb[29].mxu0 }
 0x11b   :  { %v256_v24 = vadd.f32 %v1387_v14, %v255_v23  ;;  %v257_v25 = vpop.f32.mrb[3].mxu1  ;;  %v524_v30 = vmax.f32 %v421_v21, 0.0 }
 0x11d   :  { %v426_v27 = vadd.f32 %v425_v57, %v256_v24  ;;  %v1404_v40 = vpop.f32.mrb[30].mxu0 }
 0x11e   :  { %v260_v29 = vpop.f32.mrb[4].mxu1  ;;  %v858_v42 = vpop.f32.mrb[31].mxu0 }
 0x11f   :  { %v525_v31 = vmax.f32 %v426_v27, 0.0  ;;  %v261_v32 = vadd.f32 %v1387_v14, %v260_v29  ;;  %v262_v33 = vpop.f32.mrb[5].mxu1 }
 0x121   :  { %v722_v6 = vpack.c.bf16 %v525_v31, %v524_v30  ;;  %v431_v35 = vadd.f32 %v430_v59, %v261_v32  ;;  %v1407_v48 = vpop.f32.mrb[32].mxu0 }
 0x122   :  { %v265_v37 = vpop.f32.mrb[6].mxu1  ;;  %v861_v51 = vpop.f32.mrb[33].mxu0 }
 0x123   :  { %723 = vst [vmem:[%s1481_s3] sm:$0xff] %v722_v6   ;;  %v266_v38 = vadd.f32 %v1387_v14, %v265_v37  ;;  %v267_v39 = vpop.f32.mrb[7].mxu1  ;;  %v526_v44 = vmax.f32 %v431_v35, 0.0 }
 0x125   :  { %v436_v41 = vadd.f32 %v435_v61, %v266_v38  ;;  %v1413_v55 = vpop.f32.mrb[34].mxu0 }
 0x126   :  { %v270_v43 = vpop.f32.mrb[8].mxu1  ;;  %v864_v57 = vpop.f32.mrb[35].mxu0 }
 0x127   :  { %v527_v45 = vmax.f32 %v436_v41, 0.0  ;;  %v271_v46 = vadd.f32 %v1387_v14, %v270_v43  ;;  %v272_v47 = vpop.f32.mrb[9].mxu1 }
 0x129   :  { %v727_v49 = vpack.c.bf16 %v527_v45, %v526_v44  ;;  %v441_v50 = vadd.f32 %v440_v63, %v271_v46  ;;  %v1416_v63 = vpop.f32.mrb[36].mxu0 }
 0x12a   :  { %v275_v52 = vpop.f32.mrb[10].mxu1  ;;  %v867_v5 = vpop.f32.mrb[37].mxu0 }
 0x12b   :  { %769 = vst [vmem:[%s1481_s3 + $0x8] sm:$0xff] %v727_v49   ;;  %v276_v53 = vadd.f32 %v1387_v14, %v275_v52  ;;  %v277_v54 = vpop.f32.mrb[11].mxu1  ;;  %v528_v59 = vmax.f32 %v441_v50, 0.0 }
 0x12d   :  { %v446_v56 = vadd.f32 %v445_v2, %v276_v53  ;;  %v1423_v11 = vpop.f32.mrb[38].mxu0 }
 0x12e   :  { %v280_v58 = vpop.f32.mrb[12].mxu1  ;;  %v870_v16 = vpop.f32.mrb[39].mxu0 }
 0x12f   :  { %v529_v60 = vmax.f32 %v446_v56, 0.0  ;;  %v281_v61 = vadd.f32 %v1387_v14, %v280_v58  ;;  %v282_v62 = vpop.f32.mrb[13].mxu1 }
 0x131   :  { %v732_v1 = vpack.c.bf16 %v529_v60, %v528_v59  ;;  %v451_v3 = vadd.f32 %v1374_v4, %v281_v61  ;;  %v1427_v22 = vpop.f32.mrb[40].mxu0 }
 0x132   :  { %v285_v8 = vpop.f32.mrb[14].mxu1  ;;  %v873_v25 = vpop.f32.mrb[41].mxu0 }
 0x133   :  { %770 = vst [vmem:[%s1481_s3 + $0x10] sm:$0xff] %v732_v1   ;;  %v286_v2 = vadd.f32 %v1387_v14, %v285_v8  ;;  %v287_v9 = vpop.f32.mrb[15].mxu1  ;;  %v530_v18 = vmax.f32 %v451_v3, 0.0 }
 0x135   :  { %v456_v13 = vadd.f32 %v1376_v7, %v286_v2 }
 0x136   :  { %v290_v17 = vpop.f32.mrb[16].mxu1 }
 0x137   :  { %v531_v19 = vmax.f32 %v456_v13, 0.0  ;;  %v291_v21 = vadd.f32 %v1387_v14, %v290_v17  ;;  %v292_v4 = vpop.f32.mrb[17].mxu1 }
 0x139   :  { %v737_v23 = vpack.c.bf16 %v531_v19, %v530_v18  ;;  %v461_v24 = vadd.f32 %v1378_v0, %v291_v21 }
 0x13a   :  { %v295_v27 = vpop.f32.mrb[18].mxu1 }
 0x13b   :  { %771 = vst [vmem:[%s1481_s3 + $0x18] sm:$0xff] %v737_v23   ;;  %v296_v7 = vadd.f32 %v1387_v14, %v295_v27  ;;  %v297_v28 = vpop.f32.mrb[19].mxu1  ;;  %v532_v31 = vmax.f32 %v461_v24, 0.0 }
 0x13d   :  { %v466_v29 = vadd.f32 %v1380_v10, %v296_v7 }
 0x13e   :  { %v300_v30 = vpop.f32.mrb[20].mxu1 }
 0x13f   :  { %v533_v32 = vmax.f32 %v466_v29, 0.0  ;;  %v301_v33 = vadd.f32 %v1387_v14, %v300_v30  ;;  %v302_v6 = vpop.f32.mrb[21].mxu1 }
 0x141   :  { %v742_v35 = vpack.c.bf16 %v533_v32, %v532_v31  ;;  %v471_v0 = vadd.f32 %v1382_v12, %v301_v33 }
 0x142   :  { %v305_v36 = vpop.f32.mrb[22].mxu1 }
 0x143   :  { %772 = vst [vmem:[%s1481_s3 + $0x20] sm:$0xff] %v742_v35   ;;  %v306_v37 = vadd.f32 %v1387_v14, %v305_v36  ;;  %v307_v38 = vpop.f32.mrb[23].mxu1  ;;  %v534_v41 = vmax.f32 %v471_v0, 0.0 }
 0x145   :  { %v476_v39 = vadd.f32 %v1389_v15, %v306_v37 }
 0x146   :  { %v310_v10 = vpop.f32.mrb[24].mxu1 }
 0x147   :  { %v535_v42 = vmax.f32 %v476_v39, 0.0  ;;  %v311_v43 = vadd.f32 %v1387_v14, %v310_v10  ;;  %v312_v44 = vpop.f32.mrb[25].mxu1 }
 0x149   :  { %v747_v45 = vpack.c.bf16 %v535_v42, %v534_v41  ;;  %v481_v46 = vadd.f32 %v1392_v20, %v311_v43 }
 0x14a   :  { %v315_v12 = vpop.f32.mrb[26].mxu1 }
 0x14b   :  { %773 = vst [vmem:[%s1481_s3 + $0x28] sm:$0xff] %v747_v45   ;;  %v316_v47 = vadd.f32 %v1387_v14, %v315_v12  ;;  %v317_v49 = vpop.f32.mrb[27].mxu1  ;;  %v536_v51 = vmax.f32 %v481_v46, 0.0 }
 0x14d   :  { %v486_v50 = vadd.f32 %v1395_v26, %v316_v47 }
 0x14e   :  { %v320_v15 = vpop.f32.mrb[28].mxu1 }
 0x14f   :  { %v537_v52 = vmax.f32 %v486_v50, 0.0  ;;  %v321_v53 = vadd.f32 %v1387_v14, %v320_v15  ;;  %v322_v54 = vpop.f32.mrb[29].mxu1 }
 0x151   :  { %v752_v56 = vpack.c.bf16 %v537_v52, %v536_v51  ;;  %v491_v57 = vadd.f32 %v1398_v34, %v321_v53 }
 0x152   :  { %v325_v20 = vpop.f32.mrb[30].mxu1 }
 0x153   :  { %774 = vst [vmem:[%s1481_s3 + $0x30] sm:$0xff] %v752_v56   ;;  %v326_v58 = vadd.f32 %v1387_v14, %v325_v20  ;;  %v327_v59 = vpop.f32.mrb[31].mxu1  ;;  %v538_v61 = vmax.f32 %v491_v57, 0.0 }
 0x155   :  { %v496_v60 = vadd.f32 %v1404_v40, %v326_v58 }
 0x156   :  { %v330_v26 = vpop.f32.mrb[32].mxu1 }
 0x157   :  { %v539_v62 = vmax.f32 %v496_v60, 0.0  ;;  %v331_v1 = vadd.f32 %v1387_v14, %v330_v26  ;;  %v332_v3 = vpop.f32.mrb[33].mxu1 }
 0x159   :  { %v757_v5 = vpack.c.bf16 %v539_v62, %v538_v61  ;;  %v501_v8 = vadd.f32 %v1407_v48, %v331_v1 }
 0x15a   :  { %v335_v34 = vpop.f32.mrb[34].mxu1 }
 0x15b   :  { %775 = vst [vmem:[%s1481_s3 + $0x38] sm:$0xff] %v757_v5   ;;  %v336_v2 = vadd.f32 %v1387_v14, %v335_v34  ;;  %v337_v9 = vpop.f32.mrb[35].mxu1  ;;  %v540_v16 = vmax.f32 %v501_v8, 0.0 }
 0x15d   :  { %v506_v13 = vadd.f32 %v1413_v55, %v336_v2 }
 0x15e   :  { %v340_v40 = vpop.f32.mrb[36].mxu1 }
 0x15f   :  { %v541_v17 = vmax.f32 %v506_v13, 0.0  ;;  %v341_v18 = vadd.f32 %v1387_v14, %v340_v40  ;;  %v342_v19 = vpop.f32.mrb[37].mxu1 }
 0x161   :  { %v762_v21 = vpack.c.bf16 %v541_v17, %v540_v16  ;;  %v511_v4 = vadd.f32 %v1416_v63, %v341_v18 }
 0x162   :  { %v345_v48 = vpop.f32.mrb[38].mxu1 }
 0x163   :  { %776 = vst [vmem:[%s1481_s3 + $0x40] sm:$0xff] %v762_v21   ;;  %v346_v23 = vadd.f32 %v1387_v14, %v345_v48  ;;  %v347_v24 = vpop.f32.mrb[39].mxu1  ;;  %v542_v27 = vmax.f32 %v511_v4, 0.0 }
 0x165   :  { %v516_v25 = vadd.f32 %v1423_v11, %v346_v23 }
 0x166   :  { %v350_v55 = vpop.f32.mrb[40].mxu1 }
 0x167   :  { %v543_v7 = vmax.f32 %v516_v25, 0.0  ;;  %v351_v28 = vadd.f32 %v1387_v14, %v350_v55  ;;  %v352_v29 = vpop.f32.mrb[41].mxu1 }
 0x169   :  { %v767_v30 = vpack.c.bf16 %v543_v7, %v542_v27  ;;  %v521_v31 = vadd.f32 %v1427_v22, %v351_v28 }
 0x16b   :  { %777 = vst [vmem:[%s1481_s3 + $0x48] sm:$0xff] %v767_v30   ;;  %v544_v63 = vmax.f32 %v521_v31, 0.0 }
 0x16d   :  { %v718_v32 = vpack.c.bf16 %v544_v63, %v544_v63 }
 0x16f   :  { %650 = vst [vmem:[%s1481_s3 + $0x50] sm:$0xf] %v718_v32 }

// kernel: naive_attention_forward.3
= control target key start
LH: loop header
LB: loop body
LE: loop exit
PB: predicated region body
PF: predicated region fallthrough
CT: control target
= control target key end

     0   :  { %10 = vsyncpa [#allocation4], 0  ;;  %s3113_s18 = smov 0   ;;  %s3393_s0 = inlined_call_operand.vmem [shape: bf16[2,10752], index: 0, kind: input, shape index: {}]   ;;  %s3394_s1 = inlined_call_operand.vmem [shape: bf16[10752,128], index: 1, kind: input, shape index: {}]   ;;  %s3395_s2 = inlined_call_operand.vmem [shape: f32[1,128], index: 2, kind: input, shape index: {}]   ;;  %s3396_s3 = inlined_call_operand.vmem [shape: bf16[128,128], index: 3, kind: input, shape index: {}]   ;;  %s3397_s4 = inlined_call_operand.vmem [shape: f32[1,128], index: 4, kind: input, shape index: {}]   ;;  %s3398_s5 = inlined_call_operand.hbm [shape: f32[2,128], index: 5, kind: output, shape index: {}]  }
   0x1 LB: > { %s3119_s19 = sadd.s32 4294967295, %s3074_s18   ;;  %p2374_p0 = scmp.ge.s32.totalorder %s3074_s18, 1  ;;  %s3074_s18 = sphi %s3113_s18, %s16_s18  }
   0x2   : > { %p194_p1 = scmp.lt.s32.totalorder %s3074_s18, 5 }
   0x4   : > { %p195_p2 = pnand %p2374_p0, %p194_p1 }
   0x5   : > { %s221_s20 = smul.u32 (!%p195_p2), 21, %s3119_s19  ;;  %p2376_p5 = scmp.ne.s32.totalorder (!%p195_p2), %s3119_s19, 0 }
   0x6   : > { %198 = sbr.rel (%p195_p2) target bundleno = 686 (0x2ae), region = 40 }
   0x7   : > { %s226_s21 = smul.u32 (!%p195_p2), 336, %s3119_s19  ;;  %p222_p3 = scmp.lt.s32.totalorder (!%p195_p2), %s221_s20, 83 }
   0x9   : > { %p227_p4 = scmp.lt.s32.totalorder (!%p195_p2), %s226_s21, 1343 }
   0xd   : > { %s3400_s20 = smov (!%p222_p3, %s221_s20), 83  ;;  %s3402_s21 = smov (!%p227_p4, %s226_s21), 1343 }
   0xe   : > { %s3128_s24 = scalar_lea.vmem %s3393_s0, %s3400_s20  ;;  %s2375_s25 = sshll.u32 %s3402_s21, 2  ;;  %v3076_v0 = vmov (!%p2376_p5), 0.0  }
   0xf   : > { %s3133_s28 = scalar_lea.vmem %s3394_s1, %s2375_s25  ;;  %236 = sbr.rel (%p2376_p5) target bundleno = 22 (0x16), region = 44  ;;  %237 = vst [vmem:[#allocation2] sm:$0x3] (!%p2376_p5), %v3076_v0 }
  0x16 PF: > { %v2859_v1 = vld [vmem:[%s3133_s28 + $0x40] sm:$0xff]   ;;  %v2863_v5 = vld [vmem:[%s3133_s28 + $0x48] sm:$0xff]   ;;  %v2867_v9 = vld [vmem:[%s3133_s28 + $0x50] sm:$0xff]   ;;  %v585_v30 = vlaneseq  ;;  %v3077_v36 = vmov 1966171168   ;;  %vm3079_vm0 = vmmov 0  }
  0x17   : > { %v2860_v2 = vld [vmem:[%s3133_s28 + $0xc0] sm:$0xff]   ;;  %2560 = vmatprep.subr.bf16.mxu0 %v2859_v1  ;;  %v2864_v6 = vld [vmem:[%s3133_s28 + $0xc8] sm:$0xff]   ;;  %v2868_v10 = vld [vmem:[%s3133_s28 + $0xd0] sm:$0xff]   ;;  %v583_v37 = vunpack.c.l.s4 %v3077_v36  ;;  %p2545_p6 = scmp.ne.s32.totalorder %s3119_s19, 3 }
  0x18   : > { %v2861_v3 = vld [vmem:[%s3133_s28] sm:$0xff]   ;;  %2582 = vmatprep.subr.bf16.mxu1 %v2860_v2  ;;  %v2865_v7 = vld [vmem:[%s3133_s28 + $0x8] sm:$0xff]   ;;  %v2869_v11 = vld [vmem:[%s3133_s28 + $0x10] sm:$0xff]   ;;  %v586_v34 = vshrl.u32 %v585_v30, 7  ;;  %vm3081_vm1 = vmmov (!%p2545_p6), 0  }
  0x19   : > { %v2862_v4 = vld [vmem:[%s3133_s28 + $0x80] sm:$0xff]   ;;  %2561 = vmatpush3.bf16.msra.mxu0 %v2861_v3  ;;  %v2866_v8 = vld [vmem:[%s3133_s28 + $0x88] sm:$0xff]   ;;  %v2870_v12 = vld [vmem:[%s3133_s28 + $0x90] sm:$0xff]   ;;  %v584_v40 = vunpack.c.0.s8 %v583_v37 }
  0x1a   : > { %2583 = vmatpush3.bf16.msra.mxu1 %v2862_v4  ;;  %2562 = vmatprep.subr.bf16.mxu0 %v2863_v5  ;;  %v2871_v13 = vld [vmem:[%s3133_s28 + $0x58] sm:$0xff]   ;;  %v2875_v17 = vld [vmem:[%s3133_s28 + $0x60] sm:$0xff]   ;;  %v2879_v21 = vld [vmem:[%s3133_s28 + $0x68] sm:$0xff]  }
  0x1b   : > { %2584 = vmatprep.subr.bf16.mxu1 %v2864_v6  ;;  %v2872_v14 = vld [vmem:[%s3133_s28 + $0xd8] sm:$0xff]   ;;  %v2876_v18 = vld [vmem:[%s3133_s28 + $0xe0] sm:$0xff]   ;;  %v2880_v22 = vld [vmem:[%s3133_s28 + $0xe8] sm:$0xff]   ;;  %v3171_v42 = vsub.s32 %v584_v40, %v586_v34 }
  0x1c   : > { %v2873_v15 = vld [vmem:[%s3133_s28 + $0x18] sm:$0xff]   ;;  %v2877_v19 = vld [vmem:[%s3133_s28 + $0x20] sm:$0xff]   ;;  %v2881_v23 = vld [vmem:[%s3133_s28 + $0x28] sm:$0xff]  }
  0x1d   : > { %2563 = vmatpush3.bf16.msra.mxu0 %v2865_v7  ;;  %v2874_v16 = vld [vmem:[%s3133_s28 + $0x98] sm:$0xff]   ;;  %v2878_v20 = vld [vmem:[%s3133_s28 + $0xa0] sm:$0xff]   ;;  %v2882_v24 = vld [vmem:[%s3133_s28 + $0xa8] sm:$0xff]  }
  0x1e   : > { %2585 = vmatpush3.bf16.msra.mxu1 %v2866_v8  ;;  %2564 = vmatprep.subr.bf16.mxu0 %v2867_v9  ;;  %v2883_v25 = vld [vmem:[%s3133_s28 + $0x70] sm:$0xff]   ;;  %v2887_v29 = vld [vmem:[%s3133_s28 + $0x78] sm:$0xff]   ;;  %v2892_v35 = vld [vmem:[%s3133_s28 + $0x140] sm:$0xff]  }
  0x1f   : > { %2586 = vmatprep.subr.bf16.mxu1 %v2868_v10  ;;  %v2884_v26 = vld [vmem:[%s3133_s28 + $0xf0] sm:$0xff]   ;;  %v2888_v31 = vld [vmem:[%s3133_s28 + $0xf8] sm:$0xff]   ;;  %v239_v38 = vld [vmem:[%s3128_s24] sm:$0xff] }
  0x20   : > { %v2885_v27 = vld [vmem:[%s3133_s28 + $0x30] sm:$0xff]   ;;  %v2889_v32 = vld [vmem:[%s3133_s28 + $0x38] sm:$0xff]   ;;  %v581_v39 = vcombine.high %v239_v38, %v239_v38  ;;  %v2894_v41 = vld [vmem:[%s3133_s28 + $0x1c0] sm:$0xff]   ;;  %v588_v43 = vrot.slane %v239_v38, %v3171_v42 }
  0x21   : > { %2565 = vmatpush3.bf16.msra.mxu0 %v2869_v11  ;;  %v2886_v28 = vld [vmem:[%s3133_s28 + $0xb0] sm:$0xff]   ;;  %v2890_v33 = vld [vmem:[%s3133_s28 + $0xb8] sm:$0xff]   ;;  %v2893_v49 = vld [vmem:[%s3133_s28 + $0x100] sm:$0xff]  }
  0x22   : > { %2587 = vmatpush3.bf16.msra.mxu1 %v2870_v12  ;;  %2566 = vmatprep.subr.bf16.mxu0 %v2871_v13  ;;  %v3175_v44 = vrot.slane %v581_v39, %v3171_v42  ;;  %v596_v45 = vcombine.high %v588_v43, %v588_v43  ;;  %v604_v46 = vrot.slane %v588_v43, %v3171_v42  ;;  %v2896_v52 = vld [vmem:[%s3133_s28 + $0x148] sm:$0xff]   ;;  %v2895_v54 = vld [vmem:[%s3133_s28 + $0x180] sm:$0xff]   ;;  %v2900_v58 = vld [vmem:[%s3133_s28 + $0x150] sm:$0xff]  }
  0x23   : > { %2588 = vmatprep.subr.bf16.mxu1 %v2872_v14  ;;  %v2898_v55 = vld [vmem:[%s3133_s28 + $0x1c8] sm:$0xff]   ;;  %v2902_v60 = vld [vmem:[%s3133_s28 + $0x1d0] sm:$0xff]   ;;  %v2904_v62 = vld [vmem:[%s3133_s28 + $0x158] sm:$0xff]  }
  0x24   : > { %v597_v47 = vcombine.high %v3175_v44, %v3175_v44  ;;  %v618_v48 = vrot.slane %v596_v45, %v3171_v42  ;;  %v626_v51 = vcombine.high %v604_v46, %v604_v46  ;;  %v2897_v57 = vld [vmem:[%s3133_s28 + $0x108] sm:$0xff]   ;;  %v2901_v61 = vld [vmem:[%s3133_s28 + $0x110] sm:$0xff]   ;;  %v2906_v0 = vld [vmem:[%s3133_s28 + $0x1d8] sm:$0xff]  }
  0x25   : > { %2567 = vmatpush3.bf16.msra.mxu0 %v2873_v15  ;;  %v2899_v59 = vld [vmem:[%s3133_s28 + $0x188] sm:$0xff]   ;;  %v2903_v63 = vld [vmem:[%s3133_s28 + $0x190] sm:$0xff]   ;;  %v2905_v1 = vld [vmem:[%s3133_s28 + $0x118] sm:$0xff]  }
  0x26   : > { %2589 = vmatpush3.bf16.msra.mxu1 %v2874_v16  ;;  %2568 = vmatprep.subr.bf16.mxu0 %v2875_v17  ;;  %v625_v50 = vrot.slane %v597_v47, %v3171_v42  ;;  %v628_v53 = vcombine.high %v618_v48, %v618_v48  ;;  %v2908_v2 = vld [vmem:[%s3133_s28 + $0x160] sm:$0xff]   ;;  %v2907_v3 = vld [vmem:[%s3133_s28 + $0x198] sm:$0xff]   ;;  %v2912_v6 = vld [vmem:[%s3133_s28 + $0x168] sm:$0xff]  }
  0x27   : > { %2590 = vmatprep.subr.bf16.mxu1 %v2876_v18  ;;  %1779 = vmatprep.mubr.bf16.mxu0 %v618_v48  ;;  %v2910_v4 = vld [vmem:[%s3133_s28 + $0x1e0] sm:$0xff]   ;;  %v2914_v8 = vld [vmem:[%s3133_s28 + $0x1e8] sm:$0xff]   ;;  %v2916_v10 = vld [vmem:[%s3133_s28 + $0x170] sm:$0xff]   ;;  %v611_v18 = vrot.slane %v3175_v44, %v3171_v42 }
  0x28   : > { %v629_v56 = vcombine.high %v625_v50, %v625_v50  ;;  %1819 = vmatprep.mubr.bf16.mxu1 %v628_v53  ;;  %v2909_v5 = vld [vmem:[%s3133_s28 + $0x120] sm:$0xff]   ;;  %v2913_v9 = vld [vmem:[%s3133_s28 + $0x128] sm:$0xff]   ;;  %v2918_v12 = vld [vmem:[%s3133_s28 + $0x1f0] sm:$0xff]  }
  0x29   : > { %2569 = vmatpush3.bf16.msra.mxu0 %v2877_v19  ;;  %v2911_v7 = vld [vmem:[%s3133_s28 + $0x1a0] sm:$0xff]   ;;  %v2915_v11 = vld [vmem:[%s3133_s28 + $0x1a8] sm:$0xff]   ;;  %v2917_v13 = vld [vmem:[%s3133_s28 + $0x130] sm:$0xff]  }
  0x2a   : > { %2591 = vmatpush3.bf16.msra.mxu1 %v2878_v20  ;;  %2570 = vmatprep.subr.bf16.mxu0 %v2879_v21  ;;  %v2920_v14 = vld [vmem:[%s3133_s28 + $0x178] sm:$0xff]   ;;  %v2919_v15 = vld [vmem:[%s3133_s28 + $0x1b0] sm:$0xff]   ;;  %v2924_v19 = vld [vmem:[%s3133_s28 + $0x240] sm:$0xff]  }
  0x2b   : > { %2592 = vmatprep.subr.bf16.mxu1 %v2880_v22  ;;  %v2922_v16 = vld [vmem:[%s3133_s28 + $0x1f8] sm:$0xff]   ;;  %v2926_v21 = vld [vmem:[%s3133_s28 + $0x2c0] sm:$0xff]   ;;  %v2934_v30 = vld [vmem:[%s3133_s28 + $0x2d0] sm:$0xff]  }
  0x2c   : > { %v2921_v17 = vld [vmem:[%s3133_s28 + $0x138] sm:$0xff]   ;;  %v2925_v22 = vld [vmem:[%s3133_s28 + $0x200] sm:$0xff]   ;;  %v2944_v40 = vld [vmem:[%s3133_s28 + $0x268] sm:$0xff]  }
  0x2d   : > { %2571 = vmatpush3.bf16.msra.mxu0 %v2881_v23  ;;  %v2923_v20 = vld [vmem:[%s3133_s28 + $0x1b8] sm:$0xff]   ;;  %v627_v23 = vcombine.high %v611_v18, %v611_v18  ;;  %v2940_v36 = vld [vmem:[%s3133_s28 + $0x260] sm:$0xff]   ;;  %v2946_v43 = vld [vmem:[%s3133_s28 + $0x2e8] sm:$0xff]  }
  0x2e   : > { %2593 = vmatpush3.bf16.msra.mxu1 %v2882_v24  ;;  %2572 = vmatprep.subr.bf16.mxu0 %v2883_v25  ;;  %v2928_v24 = vld [vmem:[%s3133_s28 + $0x248] sm:$0xff]   ;;  %v2927_v25 = vld [vmem:[%s3133_s28 + $0x280] sm:$0xff]   ;;  %v2938_v34 = vld [vmem:[%s3133_s28 + $0x2d8] sm:$0xff]  }
  0x2f   : > { %2594 = vmatprep.subr.bf16.mxu1 %v2884_v26  ;;  %v2930_v26 = vld [vmem:[%s3133_s28 + $0x2c8] sm:$0xff]   ;;  %v2939_v37 = vld [vmem:[%s3133_s28 + $0x298] sm:$0xff]   ;;  %v2942_v38 = vld [vmem:[%s3133_s28 + $0x2e0] sm:$0xff]  }
  0x30   : > { %v2941_v39 = vld [vmem:[%s3133_s28 + $0x220] sm:$0xff]   ;;  %v2945_v44 = vld [vmem:[%s3133_s28 + $0x228] sm:$0xff]   ;;  %v2949_v53 = vld [vmem:[%s3133_s28 + $0x230] sm:$0xff]  }
  0x31   : > { %2573 = vmatpush3.bf16.msra.mxu0 %v2885_v27  ;;  %v2929_v27 = vld [vmem:[%s3133_s28 + $0x208] sm:$0xff]  }
  0x32   : > { %2595 = vmatpush3.bf16.msra.mxu1 %v2886_v28  ;;  %2574 = vmatprep.subr.bf16.mxu0 %v2887_v29  ;;  %v2932_v28 = vld [vmem:[%s3133_s28 + $0x250] sm:$0xff]   ;;  %v2931_v29 = vld [vmem:[%s3133_s28 + $0x288] sm:$0xff]  }
  0x33   : > { %2596 = vmatprep.subr.bf16.mxu1 %v2888_v31  ;;  %v2933_v31 = vld [vmem:[%s3133_s28 + $0x210] sm:$0xff]   ;;  %v240_v45 = vld [vmem:[%s3128_s24 + $0x8] sm:$0xff] }
  0x34   : > { %v637_v47 = vrot.slane %v240_v45, %v3171_v42  ;;  %v630_v48 = vcombine.high %v240_v45, %v240_v45  ;;  %v2996_v45 = vld [vmem:[%s3133_s28 + $0x488] sm:$0xff]  }
  0x35   : > { %2575 = vmatpush3.bf16.msra.mxu0 %v2889_v32  ;;  %v2936_v32 = vld [vmem:[%s3133_s28 + $0x258] sm:$0xff]  }
  0x36   : > { %2597 = vmatpush3.bf16.msra.mxu1 %v2890_v33  ;;  %2604 = vmatprep.subr.bf16.mxu0 %v2892_v35  ;;  %v2935_v33 = vld [vmem:[%s3133_s28 + $0x290] sm:$0xff]   ;;  %v2937_v35 = vld [vmem:[%s3133_s28 + $0x218] sm:$0xff]  }
  0x37   : > { %2626 = vmatprep.subr.bf16.mxu1 %v2894_v41  ;;  %v2943_v41 = vld [vmem:[%s3133_s28 + $0x2a0] sm:$0xff]  }
  0x38   : > { %1780 = vmatmul.mubr.bf16.vlgmr.msra.gmra.mrb[0].mxu0 %v604_v46  ;;  %v2948_v46 = vld [vmem:[%s3133_s28 + $0x270] sm:$0xff]  }
  0x39   : > { %2605 = vmatpush3.bf16.msra.mxu0 %v2893_v49  ;;  %1820 = vmatmul.mubr.bf16.vlgmr.msra.gmra.mrb[0].mxu1 %v626_v51  ;;  %v2947_v49 = vld [vmem:[%s3133_s28 + $0x2a8] sm:$0xff]   ;;  %v645_v51 = vcombine.high %v637_v47, %v637_v47 }
  0x3a   : > { %2606 = vmatprep.subr.bf16.mxu0 %v2896_v52  ;;  %2627 = vmatpush3.bf16.msra.mxu1 %v2895_v54  ;;  %v3243_v52 = vrot.slane %v630_v48, %v3171_v42  ;;  %v2952_v54 = vld [vmem:[%s3133_s28 + $0x278] sm:$0xff]  }
  0x3b   : > { %1859 = vmatprep.mubr.bf16.mxu0 %v625_v50  ;;  %2628 = vmatprep.subr.bf16.mxu1 %v2898_v55  ;;  %v2950_v50 = vld [vmem:[%s3133_s28 + $0x2f0] sm:$0xff]   ;;  %v667_v55 = vrot.slane %v645_v51, %v3171_v42  ;;  %v3001_v48 = vld [vmem:[%s3133_s28 + $0x458] sm:$0xff]  }
  0x3c   : > { %1899 = vmatprep.mubr.bf16.mxu1 %v629_v56  ;;  %v2951_v56 = vld [vmem:[%s3133_s28 + $0x2b0] sm:$0xff]   ;;  %v3002_v51 = vld [vmem:[%s3133_s28 + $0x418] sm:$0xff]  }
  0x3d   : > { %2607 = vmatpush3.bf16.msra.mxu0 %v2897_v57  ;;  %v646_v57 = vcombine.high %v3243_v52, %v3243_v52 }
  0x3e   : > { %2608 = vmatprep.subr.bf16.mxu0 %v2900_v58  ;;  %2629 = vmatpush3.bf16.msra.mxu1 %v2899_v59  ;;  %v2954_v58 = vld [vmem:[%s3133_s28 + $0x2f8] sm:$0xff]   ;;  %v677_v59 = vcombine.high %v667_v55, %v667_v55 }
  0x3f   : > { %2630 = vmatprep.subr.bf16.mxu1 %v2902_v60  ;;  %v2953_v60 = vld [vmem:[%s3133_s28 + $0x238] sm:$0xff]  }
  0x41   : > { %2609 = vmatpush3.bf16.msra.mxu0 %v2901_v61  ;;  %v653_v61 = vrot.slane %v637_v47, %v3171_v42  ;;  %v2998_v47 = vld [vmem:[%s3133_s28 + $0x410] sm:$0xff]  }
  0x42   : > { %2610 = vmatprep.subr.bf16.mxu0 %v2904_v62  ;;  %2631 = vmatpush3.bf16.msra.mxu1 %v2903_v63  ;;  %v2956_v62 = vld [vmem:[%s3133_s28 + $0x340] sm:$0xff]   ;;  %v2955_v63 = vld [vmem:[%s3133_s28 + $0x2b8] sm:$0xff]  }
  0x43   : > { %2632 = vmatprep.subr.bf16.mxu1 %v2906_v0  ;;  %v674_v0 = vrot.slane %v646_v57, %v3171_v42  ;;  %v3008_v57 = vld [vmem:[%s3133_s28 + $0x4a0] sm:$0xff]  }
  0x45   : > { %2611 = vmatpush3.bf16.msra.mxu0 %v2905_v1  ;;  %v2958_v1 = vld [vmem:[%s3133_s28 + $0x3c0] sm:$0xff]  }
  0x46   : > { %2612 = vmatprep.subr.bf16.mxu0 %v2908_v2  ;;  %2633 = vmatpush3.bf16.msra.mxu1 %v2907_v3  ;;  %v2957_v2 = vld [vmem:[%s3133_s28 + $0x300] sm:$0xff]   ;;  %v675_v3 = vcombine.high %v653_v61, %v653_v61 }
  0x47   : > { %2634 = vmatprep.subr.bf16.mxu1 %v2910_v4  ;;  %v2960_v4 = vld [vmem:[%s3133_s28 + $0x348] sm:$0xff]  }
  0x49   : > { %2613 = vmatpush3.bf16.msra.mxu0 %v2909_v5  ;;  %v2959_v5 = vld [vmem:[%s3133_s28 + $0x380] sm:$0xff]  }
  0x4a   : > { %2614 = vmatprep.subr.bf16.mxu0 %v2912_v6  ;;  %2635 = vmatpush3.bf16.msra.mxu1 %v2911_v7  ;;  %v678_v6 = vcombine.high %v674_v0, %v674_v0  ;;  %v2962_v7 = vld [vmem:[%s3133_s28 + $0x3c8] sm:$0xff]  }
  0x4b   : > { %2636 = vmatprep.subr.bf16.mxu1 %v2914_v8  ;;  %v2961_v8 = vld [vmem:[%s3133_s28 + $0x308] sm:$0xff]  }
  0x4d   : > { %2615 = vmatpush3.bf16.msra.mxu0 %v2913_v9  ;;  %v2964_v9 = vld [vmem:[%s3133_s28 + $0x350] sm:$0xff]  }
  0x4e   : > { %2616 = vmatprep.subr.bf16.mxu0 %v2916_v10  ;;  %2637 = vmatpush3.bf16.msra.mxu1 %v2915_v11  ;;  %v2963_v10 = vld [vmem:[%s3133_s28 + $0x388] sm:$0xff]   ;;  %v2966_v11 = vld [vmem:[%s3133_s28 + $0x3d0] sm:$0xff]  }
  0x4f   : > { %2638 = vmatprep.subr.bf16.mxu1 %v2918_v12  ;;  %v2965_v12 = vld [vmem:[%s3133_s28 + $0x310] sm:$0xff]  }
  0x51   : > { %2617 = vmatpush3.bf16.msra.mxu0 %v2917_v13  ;;  %v2968_v13 = vld [vmem:[%s3133_s28 + $0x358] sm:$0xff]  }
  0x52   : > { %2618 = vmatprep.subr.bf16.mxu0 %v2920_v14  ;;  %2639 = vmatpush3.bf16.msra.mxu1 %v2919_v15  ;;  %v2967_v14 = vld [vmem:[%s3133_s28 + $0x390] sm:$0xff]   ;;  %v2970_v15 = vld [vmem:[%s3133_s28 + $0x3d8] sm:$0xff]  }
  0x53   : > { %2640 = vmatprep.subr.bf16.mxu1 %v2922_v16  ;;  %v2969_v16 = vld [vmem:[%s3133_s28 + $0x318] sm:$0xff]  }
  0x55   : > { %2619 = vmatpush3.bf16.msra.mxu0 %v2921_v17  ;;  %v2972_v17 = vld [vmem:[%s3133_s28 + $0x360] sm:$0xff]  }
  0x56   : > { %2648 = vmatprep.subr.bf16.mxu0 %v2924_v19  ;;  %2641 = vmatpush3.bf16.msra.mxu1 %v2923_v20  ;;  %v2974_v19 = vld [vmem:[%s3133_s28 + $0x3e0] sm:$0xff]  }
  0x57   : > { %2670 = vmatprep.subr.bf16.mxu1 %v2926_v21  ;;  %v2973_v20 = vld [vmem:[%s3133_s28 + $0x320] sm:$0xff]   ;;  %v2976_v21 = vld [vmem:[%s3133_s28 + $0x368] sm:$0xff]  }
  0x58   : > { %1860 = vmatmul.mubr.bf16.vlgmr.msra.gmra.mrb[4].mxu0 %v611_v18  ;;  %v2971_v18 = vld [vmem:[%s3133_s28 + $0x398] sm:$0xff]  }
  0x59   : > { %2649 = vmatpush3.bf16.msra.mxu0 %v2925_v22  ;;  %1900 = vmatmul.mubr.bf16.vlgmr.msra.gmra.mrb[4].mxu1 %v627_v23  ;;  %v2975_v22 = vld [vmem:[%s3133_s28 + $0x3a0] sm:$0xff]   ;;  %v2978_v23 = vld [vmem:[%s3133_s28 + $0x3e8] sm:$0xff]  }
  0x5a   : > { %2650 = vmatprep.subr.bf16.mxu0 %v2928_v24  ;;  %2671 = vmatpush3.bf16.msra.mxu1 %v2927_v25  ;;  %v2977_v24 = vld [vmem:[%s3133_s28 + $0x328] sm:$0xff]   ;;  %v2980_v25 = vld [vmem:[%s3133_s28 + $0x370] sm:$0xff]  }
  0x5b   : > { %2672 = vmatprep.subr.bf16.mxu1 %v2930_v26  ;;  %1939 = vmatprep.mubr.bf16.mxu0 %v667_v55  ;;  %v2979_v26 = vld [vmem:[%s3133_s28 + $0x3a8] sm:$0xff]   ;;  %v3006_v55 = vld [vmem:[%s3133_s28 + $0x420] sm:$0xff]  }
  0x5c   : > { %1979 = vmatprep.mubr.bf16.mxu1 %v677_v59  ;;  %v3010_v59 = vld [vmem:[%s3133_s28 + $0x428] sm:$0xff]  }
  0x5d   : > { %2651 = vmatpush3.bf16.msra.mxu0 %v2929_v27  ;;  %v2982_v27 = vld [vmem:[%s3133_s28 + $0x3f0] sm:$0xff]  }
  0x5e   : > { %2652 = vmatprep.subr.bf16.mxu0 %v2932_v28  ;;  %2673 = vmatpush3.bf16.msra.mxu1 %v2931_v29  ;;  %v2981_v28 = vld [vmem:[%s3133_s28 + $0x330] sm:$0xff]   ;;  %v2984_v29 = vld [vmem:[%s3133_s28 + $0x378] sm:$0xff]  }
  0x5f   : > { %2674 = vmatprep.subr.bf16.mxu1 %v2934_v30  ;;  %v2983_v30 = vld [vmem:[%s3133_s28 + $0x3b0] sm:$0xff]  }
  0x61   : > { %2653 = vmatpush3.bf16.msra.mxu0 %v2933_v31  ;;  %v2986_v31 = vld [vmem:[%s3133_s28 + $0x3f8] sm:$0xff]  }
  0x62   : > { %2654 = vmatprep.subr.bf16.mxu0 %v2936_v32  ;;  %2675 = vmatpush3.bf16.msra.mxu1 %v2935_v33  ;;  %v2985_v32 = vld [vmem:[%s3133_s28 + $0x338] sm:$0xff]   ;;  %v660_v33 = vrot.slane %v3243_v52, %v3171_v42  ;;  %v3005_v52 = vld [vmem:[%s3133_s28 + $0x460] sm:$0xff]  }
  0x63   : > { %2676 = vmatprep.subr.bf16.mxu1 %v2938_v34  ;;  %v2989_v34 = vld [vmem:[%s3133_s28 + $0x440] sm:$0xff]  }
  0x65   : > { %2655 = vmatpush3.bf16.msra.mxu0 %v2937_v35  ;;  %v2988_v35 = vld [vmem:[%s3133_s28 + $0x3b8] sm:$0xff]  }
  0x66   : > { %2656 = vmatprep.subr.bf16.mxu0 %v2940_v36  ;;  %2677 = vmatpush3.bf16.msra.mxu1 %v2939_v37  ;;  %v2991_v36 = vld [vmem:[%s3133_s28 + $0x4c0] sm:$0xff]  }
  0x67   : > { %2678 = vmatprep.subr.bf16.mxu1 %v2942_v38  ;;  %v2990_v37 = vld [vmem:[%s3133_s28 + $0x400] sm:$0xff]   ;;  %v676_v38 = vcombine.high %v660_v33, %v660_v33 }
  0x69   : > { %2657 = vmatpush3.bf16.msra.mxu0 %v2941_v39  ;;  %v2993_v39 = vld [vmem:[%s3133_s28 + $0x448] sm:$0xff]  }
  0x6a   : > { %2658 = vmatprep.subr.bf16.mxu0 %v2944_v40  ;;  %2679 = vmatpush3.bf16.msra.mxu1 %v2943_v41  ;;  %v2992_v40 = vld [vmem:[%s3133_s28 + $0x480] sm:$0xff]   ;;  %v2995_v41 = vld [vmem:[%s3133_s28 + $0x4c8] sm:$0xff]  }
  0x6b   : > { %2680 = vmatprep.subr.bf16.mxu1 %v2946_v43  ;;  %v2994_v43 = vld [vmem:[%s3133_s28 + $0x408] sm:$0xff]  }
  0x6d   : > { %2659 = vmatpush3.bf16.msra.mxu0 %v2945_v44  ;;  %v2997_v44 = vld [vmem:[%s3133_s28 + $0x450] sm:$0xff]  }
  0x6e   : > { %2660 = vmatprep.subr.bf16.mxu0 %v2948_v46  ;;  %2681 = vmatpush3.bf16.msra.mxu1 %v2947_v49  ;;  %v2999_v46 = vld [vmem:[%s3133_s28 + $0x4d0] sm:$0xff]  }
  0x6f   : > { %2682 = vmatprep.subr.bf16.mxu1 %v2950_v50  ;;  %v3000_v49 = vld [vmem:[%s3133_s28 + $0x490] sm:$0xff]   ;;  %v3003_v50 = vld [vmem:[%s3133_s28 + $0x4d8] sm:$0xff]  }
  0x71   : > { %2661 = vmatpush3.bf16.msra.mxu0 %v2949_v53  ;;  %v3004_v53 = vld [vmem:[%s3133_s28 + $0x498] sm:$0xff]  }
  0x72   : > { %2662 = vmatprep.subr.bf16.mxu0 %v2952_v54  ;;  %2683 = vmatpush3.bf16.msra.mxu1 %v2951_v56  ;;  %v3007_v54 = vld [vmem:[%s3133_s28 + $0x4e0] sm:$0xff]   ;;  %v3009_v56 = vld [vmem:[%s3133_s28 + $0x468] sm:$0xff]  }
  0x73   : > { %2684 = vmatprep.subr.bf16.mxu1 %v2954_v58  ;;  %v3011_v58 = vld [vmem:[%s3133_s28 + $0x4e8] sm:$0xff]  }
  0x75   : > { %2663 = vmatpush3.bf16.msra.mxu0 %v2953_v60  ;;  %v241_v60 = vld [vmem:[%s3128_s24 + $0x10] sm:$0x1f] }
  0x76   : > { %2692 = vmatprep.subr.bf16.mxu0 %v2956_v62  ;;  %2685 = vmatpush3.bf16.msra.mxu1 %v2955_v63  ;;  %v686_v62 = vrot.slane %v241_v60, %v3171_v42  ;;  %v3012_v63 = vld [vmem:[%s3133_s28 + $0x4a8] sm:$0xff]  }
  0x77   : > { %2714 = vmatprep.subr.bf16.mxu1 %v2958_v1 }
  0x78   : > { %1940 = vmatmul.mubr.bf16.vlgmr.msra.gmra.mrb[8].mxu0 %v653_v61  ;;  %v3013_v61 = vld [vmem:[%s3133_s28 + $0x470] sm:$0xff]   ;;  %v694_v1 = vcombine.high %v686_v62, %v686_v62 }
  0x79   : > { %2693 = vmatpush3.bf16.msra.mxu0 %v2957_v2  ;;  %2019 = vmatprep.mubr.bf16.mxu0 %v674_v0  ;;  %v3015_v0 = vld [vmem:[%s3133_s28 + $0x4f0] sm:$0xff]  }
  0x7a   : > { %1980 = vmatmul.mubr.bf16.vlgmr.msra.gmra.mrb[8].mxu1 %v675_v3  ;;  %2694 = vmatprep.subr.bf16.mxu0 %v2960_v4  ;;  %v3014_v2 = vld [vmem:[%s3133_s28 + $0x430] sm:$0xff]   ;;  %v3017_v3 = vld [vmem:[%s3133_s28 + $0x478] sm:$0xff]   ;;  %v715_v4 = vrot.slane %v694_v1, %v3171_v42 }
  0x7b   : > { %2715 = vmatpush3.bf16.msra.mxu1 %v2959_v5  ;;  %2059 = vmatprep.mubr.bf16.mxu1 %v678_v6  ;;  %v3016_v5 = vld [vmem:[%s3133_s28 + $0x4b0] sm:$0xff]   ;;  %v3019_v6 = vld [vmem:[%s3133_s28 + $0x4f8] sm:$0xff]  }
  0x7c   : > { %2716 = vmatprep.subr.bf16.mxu1 %v2962_v7  ;;  %v717_v7 = vcombine.high %v715_v4, %v715_v4 }
  0x7d   : > { %2695 = vmatpush3.bf16.msra.mxu0 %v2961_v8  ;;  %v3018_v8 = vld [vmem:[%s3133_s28 + $0x438] sm:$0xff]  }
  0x7e   : > { %2696 = vmatprep.subr.bf16.mxu0 %v2964_v9  ;;  %v701_v9 = vrot.slane %v686_v62, %v3171_v42 }
  0x7f   : > { %2717 = vmatpush3.bf16.msra.mxu1 %v2963_v10  ;;  %v3021_v10 = vld [vmem:[%s3133_s28 + $0x4b8] sm:$0xff]  }
  0x80   : > { %2718 = vmatprep.subr.bf16.mxu1 %v2966_v11  ;;  %v3022_v11 = vld [vmem:[%s3133_s28 + $0x500] sm:$0xff]  }
  0x81   : > { %2697 = vmatpush3.bf16.msra.mxu0 %v2965_v12  ;;  %v3078_v12 = vmov 0.0  }
  0x82   : > { %2698 = vmatprep.subr.bf16.mxu0 %v2968_v13  ;;  %v716_v13 = vcombine.high %v701_v9, %v701_v9 }
  0x83   : > { %2719 = vmatpush3.bf16.msra.mxu1 %v2967_v14  ;;  %v3023_v14 = vld [vmem:[%s3133_s28 + $0x508] sm:$0xff]  }
  0x84   : > { %2720 = vmatprep.subr.bf16.mxu1 %v2970_v15  ;;  %v3024_v15 = vld [vmem:[%s3133_s28 + $0x510] sm:$0xff]  }
  0x85   : > { %2699 = vmatpush3.bf16.msra.mxu0 %v2969_v16  ;;  %v3025_v16 = vld [vmem:[%s3133_s28 + $0x518] sm:$0xff]  }
  0x86   : > { %2700 = vmatprep.subr.bf16.mxu0 %v2972_v17  ;;  %v3026_v17 = vld [vmem:[%s3133_s28 + $0x520] sm:$0xff]  }
  0x87   : > { %2721 = vmatpush3.bf16.msra.mxu1 %v2971_v18  ;;  %v3027_v18 = vld [vmem:[%s3133_s28 + $0x528] sm:$0xff]  }
  0x88   : > { %2722 = vmatprep.subr.bf16.mxu1 %v2974_v19  ;;  %v679_v19 = vcombine.high %v241_v60, %v241_v60 }
  0x89   : > { %2701 = vmatpush3.bf16.msra.mxu0 %v2973_v20  ;;  %v3028_v20 = vld [vmem:[%s3133_s28 + $0x530] sm:$0xff]  }
  0x8a   : > { %2702 = vmatprep.subr.bf16.mxu0 %v2976_v21  ;;  %v693_v21 = vrot.slane %v679_v19, %v3171_v42  ;;  %v238_v19 = vld [vmem:[#allocation2] sm:$0x3] }
  0x8b   : > { %2723 = vmatpush3.bf16.msra.mxu1 %v2975_v22  ;;  %v3029_v22 = vld [vmem:[%s3133_s28 + $0x538] sm:$0xff]  }
  0x8c   : > { %2724 = vmatprep.subr.bf16.mxu1 %v2978_v23  ;;  %v708_v23 = vrot.slane %v693_v21, %v3171_v42 }
  0x8d   : > { %2703 = vmatpush3.bf16.msra.mxu0 %v2977_v24 }
  0x8e   : > { %2704 = vmatprep.subr.bf16.mxu0 %v2980_v25 }
  0x8f   : > { %2725 = vmatpush3.bf16.msra.mxu1 %v2979_v26 }
  0x90   : > { %2726 = vmatprep.subr.bf16.mxu1 %v2982_v27 }
  0x91   : > { %2705 = vmatpush3.bf16.msra.mxu0 %v2981_v28 }
  0x92   : > { %2706 = vmatprep.subr.bf16.mxu0 %v2984_v29 }
  0x93   : > { %2727 = vmatpush3.bf16.msra.mxu1 %v2983_v30 }
  0x94   : > { %2728 = vmatprep.subr.bf16.mxu1 %v2986_v31 }
  0x95   : > { %2707 = vmatpush3.bf16.msra.mxu0 %v2985_v32 }
  0x96   : > { %2736 = vmatprep.subr.bf16.mxu0 %v2989_v34 }
  0x97   : > { %2729 = vmatpush3.bf16.msra.mxu1 %v2988_v35 }
  0x98   : > { %2020 = vmatmul.mubr.bf16.vlgmr.msra.gmra.mrb[12].mxu0 %v660_v33  ;;  %2758 = vmatprep.subr.bf16.mxu1 %v2991_v36 }
  0x99   : > { %2737 = vmatpush3.bf16.msra.mxu0 %v2990_v37  ;;  %2099 = vmatprep.mubr.bf16.mxu0 %v715_v4 }
  0x9a   : > { %2060 = vmatmul.mubr.bf16.vlgmr.msra.gmra.mrb[12].mxu1 %v676_v38  ;;  %2738 = vmatprep.subr.bf16.mxu0 %v2993_v39 }
  0x9b   : > { %2759 = vmatpush3.bf16.msra.mxu1 %v2992_v40  ;;  %2139 = vmatprep.mubr.bf16.mxu1 %v717_v7 }
  0x9c   : > { %2760 = vmatprep.subr.bf16.mxu1 %v2995_v41 }
  0x9d   : > { %2739 = vmatpush3.bf16.msra.mxu0 %v2994_v43 }
  0x9e   : > { %2740 = vmatprep.subr.bf16.mxu0 %v2997_v44 }
  0x9f   : > { %2761 = vmatpush3.bf16.msra.mxu1 %v2996_v45 }
  0xa0   : > { %2762 = vmatprep.subr.bf16.mxu1 %v2999_v46 }
  0xa1   : > { %2741 = vmatpush3.bf16.msra.mxu0 %v2998_v47 }
  0xa2   : > { %2742 = vmatprep.subr.bf16.mxu0 %v3001_v48 }
  0xa3   : > { %2763 = vmatpush3.bf16.msra.mxu1 %v3000_v49 }
  0xa4   : > { %2764 = vmatprep.subr.bf16.mxu1 %v3003_v50 }
  0xa5   : > { %2743 = vmatpush3.bf16.msra.mxu0 %v3002_v51 }
  0xa6   : > { %2744 = vmatprep.subr.bf16.mxu0 %v3005_v52 }
  0xa7   : > { %2765 = vmatpush3.bf16.msra.mxu1 %v3004_v53 }
  0xa8   : > { %2766 = vmatprep.subr.bf16.mxu1 %v3007_v54 }
  0xa9   : > { %2745 = vmatpush3.bf16.msra.mxu0 %v3006_v55 }
  0xaa   : > { %2746 = vmatprep.subr.bf16.mxu0 %v3009_v56 }
  0xab   : > { %2767 = vmatpush3.bf16.msra.mxu1 %v3008_v57 }
  0xac   : > { %2768 = vmatprep.subr.bf16.mxu1 %v3011_v58 }
  0xad   : > { %2747 = vmatpush3.bf16.msra.mxu0 %v3010_v59 }
  0xae   : > { %2748 = vmatprep.subr.bf16.mxu0 %v3013_v61 }
  0xaf   : > { %2769 = vmatpush3.bf16.msra.mxu1 %v3012_v63 }
  0xb0   : > { %2770 = vmatprep.subr.bf16.mxu1 %v3015_v0 }
  0xb1   : > { %2749 = vmatpush3.bf16.msra.mxu0 %v3014_v2 }
  0xb2   : > { %2750 = vmatprep.subr.bf16.mxu0 %v3017_v3 }
  0xb3   : > { %2771 = vmatpush3.bf16.msra.mxu1 %v3016_v5 }
  0xb4   : > { %2772 = vmatprep.subr.bf16.mxu1 %v3019_v6 }
  0xb5   : > { %2751 = vmatpush3.bf16.msra.mxu0 %v3018_v8 }
  0xb6   : > { %2798 = vmatprep.subr.bf16.mxu0 %v3078_v12 }
  0xb7   : > { %2773 = vmatpush3.bf16.msra.mxu1 %v3021_v10 }
  0xb8   : > { %2100 = vmatmul.mubr.bf16.vlgmr.msra.gmra.mrb[16].mxu0 %v701_v9 }
  0xb9   : > { %2799 = vmatpush3.bf16.msra.mxu0 %v3022_v11  ;;  %2814 = vmatprep.mubr.msk.bf16.mxu0 %vm3079_vm0, %v3078_v12 }
  0xba   : > { %2140 = vmatmul.mubr.bf16.vlgmr.msra.gmra.mrb[16].mxu1 %v716_v13  ;;  %2800 = vmatprep.subr.bf16.mxu0 %v3078_v12 }
  0xbd   : > { %2801 = vmatpush3.bf16.msra.mxu0 %v3023_v14 }
  0xbe   : > { %2802 = vmatprep.subr.bf16.mxu0 %v3078_v12 }
  0xc1   : > { %2803 = vmatpush3.bf16.msra.mxu0 %v3024_v15 }
  0xc2   : > { %2804 = vmatprep.subr.bf16.mxu0 %v3078_v12 }
  0xc5   : > { %2805 = vmatpush3.bf16.msra.mxu0 %v3025_v16 }
  0xc6   : > { %2806 = vmatprep.subr.bf16.mxu0 %v3078_v12 }
  0xc9   : > { %2807 = vmatpush3.bf16.msra.mxu0 %v3026_v17 }
  0xca   : > { %2808 = vmatprep.subr.bf16.mxu0 %v3078_v12 }
  0xcd   : > { %2809 = vmatpush3.bf16.msra.mxu0 %v3027_v18 }
  0xce   : > { %2810 = vmatprep.subr.bf16.mxu0 %v3078_v12 }
  0xd1   : > { %2811 = vmatpush3.bf16.msra.mxu0 %v3028_v20 }
  0xd2   : > { %2812 = vmatprep.subr.bf16.mxu0 %v3078_v12 }
  0xd5   : > { %2813 = vmatpush3.bf16.msra.mxu0 %v3029_v22 }
  0xd8   : > { %2815 = vmatmul.mubr.bf16.vlgmr.msra.gmra.mrb[20].mxu0 %v708_v23 }
 0x10b   : > { %v2576_v24 = vpop.f32.mrb[0].mxu0 }
 0x10c   : > { %v2577_v25 = vpop.f32.mrb[1].mxu0  ;;  %v2598_v26 = vpop.f32.mrb[0].mxu1 }
 0x10d   : > { %v2578_v27 = vadd.f32 %v2577_v25, %v2576_v24  ;;  %v2579_v28 = vpop.f32.mrb[2].mxu0  ;;  %v2599_v29 = vpop.f32.mrb[1].mxu1 }
 0x10e   : > { %v2580_v30 = vpop.f32.mrb[3].mxu0  ;;  %v2600_v31 = vadd.f32 %v2599_v29, %v2598_v26  ;;  %v2601_v32 = vpop.f32.mrb[2].mxu1  ;;  %v3030_v26 = vld [vmem:[%s3396_s3] sm:$0xff] (!%p2545_p6)   ;;  %v3031_v28 = vld [vmem:[%s3396_s3 + $0x8] sm:$0xff] (!%p2545_p6)   ;;  %v3032_v29 = vld [vmem:[%s3396_s3 + $0x10] sm:$0xff] (!%p2545_p6)  }
 0x10f   : > { %v2602_v33 = vpop.f32.mrb[3].mxu1  ;;  %v3033_v30 = vld [vmem:[%s3396_s3 + $0x18] sm:$0xff] (!%p2545_p6)   ;;  %v3035_v32 = vld [vmem:[%s3396_s3 + $0x28] sm:$0xff] (!%p2545_p6)  }
 0x110   : > { %v1822_v34 = vadd.f32 %v2600_v31, %v2578_v27  ;;  %v3080_v27 = vmov (!%p2545_p6), 0.0   ;;  %v3034_v31 = vld [vmem:[%s3396_s3 + $0x20] sm:$0xff] (!%p2545_p6)  }
 0x111   : > { %2818 = vmatprep.subr.bf16.mxu0 (!%p2545_p6), %v3080_v27  ;;  %2834 = vmatprep.mubr.msk.bf16.mxu0 (!%p2545_p6), %vm3081_vm1, %v3080_v27 }
 0x112   : > { %2819 = vmatpush3.bf16.msra.mxu0 (!%p2545_p6), %v3030_v26 }
 0x113   : > { %2820 = vmatprep.subr.bf16.mxu0 (!%p2545_p6), %v3080_v27 }
 0x116   : > { %2821 = vmatpush3.bf16.msra.mxu0 (!%p2545_p6), %v3031_v28 }
 0x117   : > { %2822 = vmatprep.subr.bf16.mxu0 (!%p2545_p6), %v3080_v27 }
 0x11a   : > { %2823 = vmatpush3.bf16.msra.mxu0 (!%p2545_p6), %v3032_v29 }
 0x11b   : > { %2824 = vmatprep.subr.bf16.mxu0 (!%p2545_p6), %v3080_v27 }
 0x11e   : > { %2825 = vmatpush3.bf16.msra.mxu0 (!%p2545_p6), %v3033_v30 }
 0x11f   : > { %2826 = vmatprep.subr.bf16.mxu0 (!%p2545_p6), %v3080_v27 }
 0x122   : > { %2827 = vmatpush3.bf16.msra.mxu0 (!%p2545_p6), %v3034_v31 }
 0x123   : > { %2828 = vmatprep.subr.bf16.mxu0 (!%p2545_p6), %v3080_v27 }
 0x126   : > { %2829 = vmatpush3.bf16.msra.mxu0 (!%p2545_p6), %v3035_v32 }
 0x127   : > { %2830 = vmatprep.subr.bf16.mxu0 (!%p2545_p6), %v3080_v27 }
 0x12b   : > { %v2620_v35 = vpop.f32.mrb[4].mxu0 }
 0x12c   : > { %v2621_v36 = vpop.f32.mrb[5].mxu0  ;;  %v2642_v39 = vpop.f32.mrb[4].mxu1 }
 0x12d   : > { %v2622_v37 = vadd.f32 %v2621_v36, %v2620_v35  ;;  %v2623_v38 = vpop.f32.mrb[6].mxu0  ;;  %v2643_v42 = vpop.f32.mrb[5].mxu1  ;;  %v3036_v36 = vld [vmem:[%s3396_s3 + $0x30] sm:$0xff] (!%p2545_p6)  }
 0x12e   : > { %v2624_v40 = vpop.f32.mrb[7].mxu0  ;;  %v2644_v43 = vadd.f32 %v2643_v42, %v2642_v39  ;;  %v2645_v44 = vpop.f32.mrb[6].mxu1  ;;  %2831 = vmatpush3.bf16.msra.mxu0 (!%p2545_p6), %v3036_v36  ;;  %v3037_v38 = vld [vmem:[%s3396_s3 + $0x38] sm:$0xff] (!%p2545_p6)  }
 0x12f   : > { %v1862_v41 = vadd.f32 %v2622_v37, %v1822_v34  ;;  %v2646_v45 = vpop.f32.mrb[7].mxu1  ;;  %v2546_v34 = vld [vmem:[%s3395_s2] ss:$0 sm:$0xff] (!%p2545_p6)  ;;  %2832 = vmatprep.subr.bf16.mxu0 (!%p2545_p6), %v3080_v27 }
 0x130   : > { %v2547_v40 = vld [vmem:[%s3397_s4] ss:$0 sm:$0xff] (!%p2545_p6) }
 0x131   : > { %v1902_v46 = vadd.f32 %v2644_v43, %v1862_v41 }
 0x132   : > { %2833 = vmatpush3.bf16.msra.mxu0 (!%p2545_p6), %v3037_v38 }
 0x14b   : > { %v2664_v47 = vpop.f32.mrb[8].mxu0 }
 0x14c   : > { %v2665_v48 = vpop.f32.mrb[9].mxu0 }
 0x14d   : > { %v2666_v49 = vadd.f32 %v2665_v48, %v2664_v47  ;;  %v2667_v50 = vpop.f32.mrb[10].mxu0  ;;  %v2686_v51 = vpop.f32.mrb[8].mxu1 }
 0x14e   : > { %v2668_v52 = vpop.f32.mrb[11].mxu0  ;;  %v2687_v53 = vpop.f32.mrb[9].mxu1 }
 0x14f   : > { %v1942_v54 = vadd.f32 %v2666_v49, %v1902_v46  ;;  %v2688_v55 = vadd.f32 %v2687_v53, %v2686_v51  ;;  %v2689_v56 = vpop.f32.mrb[10].mxu1 }
 0x150   : > { %v2690_v57 = vpop.f32.mrb[11].mxu1 }
 0x151   : > { %v1982_v58 = vadd.f32 %v2688_v55, %v1942_v54 }
 0x16b   : > { %v2708_v59 = vpop.f32.mrb[12].mxu0 }
 0x16c   : > { %v2709_v60 = vpop.f32.mrb[13].mxu0 }
 0x16d   : > { %v2710_v61 = vadd.f32 %v2709_v60, %v2708_v59  ;;  %v2711_v62 = vpop.f32.mrb[14].mxu0  ;;  %v2730_v63 = vpop.f32.mrb[12].mxu1 }
 0x16e   : > { %v2712_v0 = vpop.f32.mrb[15].mxu0  ;;  %v2731_v1 = vpop.f32.mrb[13].mxu1 }
 0x16f   : > { %v2022_v2 = vadd.f32 %v2710_v61, %v1982_v58  ;;  %v2732_v3 = vadd.f32 %v2731_v1, %v2730_v63  ;;  %v2733_v4 = vpop.f32.mrb[14].mxu1 }
 0x170   : > { %v2734_v5 = vpop.f32.mrb[15].mxu1 }
 0x171   : > { %v2062_v6 = vadd.f32 %v2732_v3, %v2022_v2 }
 0x18b   : > { %v2752_v7 = vpop.f32.mrb[16].mxu0 }
 0x18c   : > { %v2753_v8 = vpop.f32.mrb[17].mxu0 }
 0x18d   : > { %v2754_v9 = vadd.f32 %v2753_v8, %v2752_v7  ;;  %v2755_v10 = vpop.f32.mrb[18].mxu0  ;;  %v2774_v11 = vpop.f32.mrb[16].mxu1 }
 0x18e   : > { %v2756_v12 = vpop.f32.mrb[19].mxu0  ;;  %v2775_v13 = vpop.f32.mrb[17].mxu1 }
 0x18f   : > { %v2102_v14 = vadd.f32 %v2754_v9, %v2062_v6  ;;  %v2776_v15 = vadd.f32 %v2775_v13, %v2774_v11  ;;  %v2777_v16 = vpop.f32.mrb[18].mxu1 }
 0x190   : > { %v2778_v17 = vpop.f32.mrb[19].mxu1 }
 0x191   : > { %v2142_v18 = vadd.f32 %v2776_v15, %v2102_v14 }
 0x1aa   : > { %2192 = sbr.rel (%p2545_p6) target bundleno = 661 (0x295), region = 48 }
 0x1ab   : > { %v2181_v20 = vpop.f32.mrb[20].mxu0 }
 0x1ac   : > { %v2182_v21 = vadd.f32 %v2181_v20, %v2142_v18  ;;  %v2816_v22 = vpop.f32.mrb[21].mxu0 }
 0x1ad   : > { %v2184_v23 = vpop.f32.mrb[22].mxu0 }
 0x1ae   : > { %v2187_v24 = vadd.f32 %v2182_v21, %v238_v19  ;;  %v2817_v25 = vpop.f32.mrb[23].mxu0 }
 0x1b0   : > { %2188 = vst [vmem:[#allocation2] sm:$0x3] %v2187_v24 }
 0x1b7   : > { %v2193_v33 = vld [vmem:[#allocation2] sm:$0x3] }
 0x1b8   : > { %v2201_v35 = vadd.f32 %v2546_v34, %v2193_v33 }
 0x1ba   : > { %v2202_v37 = vmax.f32 %v2201_v35, 0.0 }
 0x1bc   : > { %v2203_v39 = vpack.c.bf16 %v2202_v37, %v2202_v37 }
 0x1be   : > { %2835 = vmatmul.mubr.bf16.vlgmr.msra.gmra.mrb[0].mxu0 %v2203_v39 }
 0x291   : > { %v2309_v42 = vpop.f32.mrb[0].mxu0 }
 0x292   : > { %v2310_v41 = vadd.f32 %v2547_v40, %v2309_v42  ;;  %v2836_v43 = vpop.f32.mrb[1].mxu0 }
 0x293   : > { %v2312_v44 = vpop.f32.mrb[2].mxu0 }
 0x294   : > { %2315 = vst [vmem:[#allocation3] sm:$0x3] %v2310_v41  ;;  %v2837_v45 = vpop.f32.mrb[3].mxu0 }
 0x295 PF: > { %p2842_p7 = scmp.eq.s32.totalorder %s3119_s19, 3  ;;  %s3082_s26 = smov [#allocation3]  }
 0x296   : > { %s2323_s27 = sshll.u32 %s3082_s26, 4  ;;  %s2324_s27 = int_to_ptr.vmem [resolvable:$true] %s2323_s27 }
 0x297   : > { %s3038_s28 = scalar_lea.vmem %s2324_s27, 32  ;;  %p3045_p11 = scmp.lt.s32.totalorder %s2324_s27, %s2324_s27 }
 0x298   : > { %p3039_p8 = scmp.ne.s32.totalorder %s2324_s27, %s3038_s28  ;;  %p3046_p12 = scmp.lt.s32.totalorder %s3038_s28, %s3038_s28 }
 0x29a   : > { %p3040_p9 = pnand %p3039_p8, %p2842_p7  ;;  %p3047_p13 = por %p3046_p12, %p3045_p11 }
 0x29c   : > { %p3041_p10 = pneg %p3040_p9 }
 0x29e   : > { %p3048_p0 = pnand %p3047_p13, %p3041_p10 }
 0x2a0   : > { %3051 = shalt.err (!%p3048_p0)
}
 0x2a1   : > { %s3052_s6 = scalar_lea.hbm %s3398_s5, 32 }
 0x2a2   : > { %p3053_p1 = scmp.ne.s32.totalorder %s3398_s5, %s3052_s6  ;;  %p3058_p4 = scmp.lt.u32.totalorder %s3052_s6, %s3398_s5 }
 0x2a4   : > { %p3054_p2 = pnand %p3053_p1, %p2842_p7 }
 0x2a6   : > { %p3055_p3 = pneg %p3054_p2 }
 0x2a8   : > { %p3060_p5 = pnand %p3058_p4, %p3055_p3 }
 0x2aa   : > { %3063 = shalt.err (!%p3060_p5)
}
 0x2ab   : > { %2839 = dma.vmem_to_hbm [thread:$0]  (%p2842_p7), %s2324_s27, 32, %s3398_s5, [#allocation4]  }
 0x2ac   : > { %3069 = dma.done.wait (%p2842_p7), [#allocation4], 32  }
 0x2ad   : > { %3071 = vsyncadd (%p2842_p7), [#allocation4], 4294967264 }
 0x2ae PF: > { %s16_s18 = sadd.s32 1, %s3074_s18  }
 0x2af   : > { %p13_p6 = scmp.ge.s32.totalorder %s16_s18, 6  }
 0x2b1   :  { %15 = sbr.rel (!%p13_p6) target bundleno = 1 (0x1), region = 78 }
 0x2b8   :  { %2336 = vsyncpa [#allocation4], 1 }
 0x2b9   :  { %2338 = vsyncpa [#allocation4 + $0x1], 1 }

</bundles_post_ra>
